<compile_context>
chip_gen: v7x
topology: tpu7x:2x2x1
jax: 0.10.0
libtpu: 0.0.40
codegen_flags: <defaults>
</compile_context>

<pallas_src>
import jax
import jax.numpy as jnp
import numpy as np
from jax.experimental import pallas as pl
from jax.experimental.pallas import tpu as pltpu


# --------------------------------------------------------------------------
# Parameter slab packing: one padded f32 array + static row offsets
# --------------------------------------------------------------------------
def pack_params(params):
    entries = [
        ("w1", params["w1"]), ("b1", params["b1"].reshape(1, -1)),
        ("w2", params["w2"]), ("b2", params["b2"].reshape(1, -1)),
        ("w3", params["w3"]), ("b3", params["b3"].reshape(1, -1)),
        ("w_att", params["w_att"]),
        ("w_fc", params["w_fc"]), ("b_fc", params["b_fc"].reshape(1, -1)),
        ("w_sc", params["w_sc"]), ("b_sc", params["b_sc"].reshape(1, -1)),
    ]
    width = max(int(a.shape[1]) for _, a in entries)     # 64 for this config
    offsets, pieces, rows = {}, [], 0
    for name, arr in entries:
        r, c = int(arr.shape[0]), int(arr.shape[1])
        offsets[name] = (rows, r, c)
        pieces.append(jnp.pad(arr.astype(jnp.float32), ((0, 0), (0, width - c))))
        rows += r
    pad_rows = (-rows) % 8                                # clean sublane count
    if pad_rows:
        pieces.append(jnp.zeros((pad_rows, width), jnp.float32))
    slab = jnp.concatenate(pieces, axis=0)
    return slab, offsets


# --------------------------------------------------------------------------
# Fused kernel: 3 x GCN -> attention pooling -> MLP head -> log_softmax
# (one grid step = one chunk of TB graphs, block-diagonal adjacency)
# --------------------------------------------------------------------------
def make_kernel(tb, n, offsets):
    tbn = tb * n
    f32 = jnp.float32

    def kernel(adj_ref, x_ref, p_ref, o_ref):
        def getp(name):
            off, r, c = offsets[name]
            return p_ref[pl.ds(off, r), pl.ds(0, c)]

        adj = adj_ref[0]                                  # [TB*N, TB*N] block-diag
        h = x_ref[...]                                    # [TB*N, F]

        # --- three GCN layers: relu(adj @ (h @ W) + b) ---------------------
        for wname, bname in (("w1", "b1"), ("w2", "b2"), ("w3", "b3")):
            w = getp(wname)
            b = getp(bname)
            support = jnp.dot(h, w, preferred_element_type=f32)
            agg = jnp.dot(adj, support, preferred_element_type=f32)
            h = jnp.maximum(agg + b, 0.0)

        f3 = h.shape[1]                                   # 32
        h3 = h.reshape(tb, n, f3)                         # per-graph view

        # --- AttentionModule pooling (per graph) ---------------------------
        # mean(h @ W_att, axis=node) == mean(h, axis=node) @ W_att (linearity)
        mean_h = jnp.mean(h3, axis=1)                                   # [TB, F3]
        ctx = jnp.dot(mean_h, getp("w_att"), preferred_element_type=f32)
        tg = jnp.tanh(ctx)                                              # [TB, F3]
        scores = jnp.sum(h3 * tg[:, None, :], axis=2, keepdims=True)    # [TB, N, 1]
        sig = pl.reciprocal(1.0 + jnp.exp(-scores), approx=True)        # sigmoid (EUP)
        pooled = jnp.sum(h3 * sig, axis=1)                              # [TB, F3]

        # --- MLP head + log_softmax ----------------------------------------
        z = jnp.dot(pooled, getp("w_fc"), preferred_element_type=f32) + getp("b_fc")
        z = jnp.maximum(z, 0.0)                                         # [TB, 32]
        s = jnp.dot(z, getp("w_sc"), preferred_element_type=f32) + getp("b_sc")

        m = jnp.max(s, axis=1, keepdims=True)
        e = s - m
        lse = jnp.log(jnp.sum(jnp.exp(e), axis=1, keepdims=True))
        o_ref[...] = e - lse                                            # [TB, C]

    return kernel


# --------------------------------------------------------------------------
# Wrapper: batch grid over chunks of graphs; params resident across the grid
# --------------------------------------------------------------------------
def gcn_cn_v4_forward(adj, features, params, *, graphs_per_block=8):
    B, N, _ = adj.shape
    F = features.shape[-1]
    C = params["w_sc"].shape[1]
    TB = min(graphs_per_block, B)
    assert B % TB == 0, "batch must be a multiple of graphs_per_block"
    NB = B // TB
    TBN = TB * N

    # PyG-style block-diagonal batched adjacency (caller-side layout plumbing):
    # every in-kernel matmul becomes a dense 2-D dot with M = TB*N rows.
    eye = jnp.eye(TB, dtype=adj.dtype)
    adj_bd = jnp.einsum("gbij,bc->gbicj", adj.reshape(NB, TB, N, N), eye)
    adj_bd = adj_bd.reshape(NB, TBN, TBN)

    x2d = features.reshape(B * N, F).astype(jnp.float32)
    slab, offsets = pack_params(params)

    kernel = make_kernel(TB, N, offsets)

    # Advisory cost estimate (flops ~ 2*MNK summed over matmuls).
    flops = NB * (
        2 * TBN * F * 64 + 2 * TBN * TBN * 64 +
        2 * TBN * 64 * 32 + 2 * TBN * TBN * 32 +
        2 * TBN * 32 * 32 + 2 * TBN * TBN * 32 +
        2 * TB * 32 * 32 +                     # ctx = mean(h) @ W_att
        2 * TB * 32 * 32 + 2 * TB * 32 * C)    # fc + scoring
    transcendentals = NB * (TB * 32 + 2 * TBN + TB * C + TB)
    bytes_accessed = int((adj_bd.size + x2d.size + slab.size + B * C) * 4)

    grid_spec = pltpu.PrefetchScalarGridSpec(
        num_scalar_prefetch=0,
        grid=(NB,),
        in_specs=[
            pl.BlockSpec((1, TBN, TBN), lambda g: (g, 0, 0)),     # adj chunk
            pl.BlockSpec((TBN, F), lambda g: (g, 0)),             # features chunk
            pl.BlockSpec(slab.shape, lambda g: (0, 0)),           # params, resident
        ],
        out_specs=pl.BlockSpec((TB, C), lambda g: (g, 0)),
    )

    return pl.pallas_call(
        kernel,
        out_shape=jax.ShapeDtypeStruct((B, C), jnp.float32),
        grid_spec=grid_spec,
        compiler_params=pltpu.CompilerParams(
            dimension_semantics=("parallel",)),
        cost_estimate=pl.CostEstimate(
            flops=flops,
            transcendentals=transcendentals,
            bytes_accessed=bytes_accessed),
    )(adj_bd, x2d, slab)


# --------------------------------------------------------------------------
# Parameter init (GCN_CN_v4 sizes: filters 64/32/32, bottleneck 32)
# --------------------------------------------------------------------------
def init_params(key, feature_dim_size, num_classes):
    f1, f2, f3, bn = 64, 32, 32, 32
    ks = jax.random.split(key, 8)

    def uniform_fan_in(k, fan_in, shape):
        s = 1.0 / np.sqrt(fan_in)
        return jax.random.uniform(k, shape, jnp.float32, -s, s)

    def xavier(k, fan_in, fan_out):
        s = np.sqrt(6.0 / (fan_in + fan_out))
        return jax.random.uniform(k, (fan_in, fan_out), jnp.float32, -s, s)

    return {
        "w1": uniform_fan_in(ks[0], feature_dim_size, (feature_dim_size, f1)),
        "b1": jnp.zeros((f1,), jnp.float32),
        "w2": uniform_fan_in(ks[1], f1, (f1, f2)),
        "b2": jnp.zeros((f2,), jnp.float32),
        "w3": uniform_fan_in(ks[2], f2, (f2, f3)),
        "b3": jnp.zeros((f3,), jnp.float32),
        "w_att": xavier(ks[3], f3, f3),
        "w_fc": uniform_fan_in(ks[4], f3, (f3, bn)),
        "b_fc": uniform_fan_in(ks[5], f3, (bn,)),
        "w_sc": uniform_fan_in(ks[6], bn, (bn, num_classes)),
        "b_sc": uniform_fan_in(ks[7], bn, (num_classes,)),
    }


# --------------------------------------------------------------------------
# Pure-JAX reference (per graph, exact module semantics in eval mode)
# --------------------------------------------------------------------------
def reference_forward(adj, features, params):
    def one_graph(a, x):
        def gcn(h, w, b):
            return jax.nn.relu(a @ (h @ w) + b)
        h = gcn(x, params["w1"], params["b1"])
        h = gcn(h, params["w2"], params["b2"])
        h = gcn(h, params["w3"], params["b3"])
        ctx = jnp.mean(h @ params["w_att"], axis=0)
        tg = jnp.tanh(ctx)
        sig = jax.nn.sigmoid(h @ tg[:, None])
        pooled = (h.T @ sig).T
        z = jax.nn.relu(pooled @ params["w_fc"] + params["b_fc"])
        s = z @ params["w_sc"] + params["b_sc"]
        return jax.nn.log_softmax(s, axis=1)[0]
    return jax.vmap(one_graph)(adj, features)


if __name__ == "__main__":
    B = 16                 # graphs per batch
    N = 16                 # nodes per graph
    FEATURE_DIM = 32       # feature_dim_size
    NUM_CLASSES = 4
    TB = 8                 # graphs per grid step

    key = jax.random.PRNGKey(0)
    k_adj, k_feat, k_par = jax.random.split(key, 3)

    # Deterministic synthetic graphs: random symmetric adjacency, GCNConv-style
    # symmetric normalization with self loops: D^-1/2 (A + I) D^-1/2.
    a = (jax.random.uniform(k_adj, (B, N, N)) > 0.7).astype(jnp.float32)
    a = jnp.maximum(a, jnp.transpose(a, (0, 2, 1)))
    a_hat = jnp.minimum(a + jnp.eye(N, dtype=jnp.float32)[None], 1.0)
    d_inv_sqrt = 1.0 / jnp.sqrt(jnp.sum(a_hat, axis=2))
    adj = a_hat * d_inv_sqrt[:, :, None] * d_inv_sqrt[:, None, :]

    features = jax.random.normal(k_feat, (B, N, FEATURE_DIM), jnp.float32)
    params = init_params(k_par, FEATURE_DIM, NUM_CLASSES)

    out = gcn_cn_v4_forward(adj, features, params, graphs_per_block=TB)
    out = jax.block_until_ready(out)

    assert out.shape == (B, NUM_CLASSES)
    assert bool(jnp.all(jnp.isfinite(out)))
    # every log_softmax row should exp-sum to ~1
    row_sums = jnp.sum(jnp.exp(out), axis=1)
    assert bool(jnp.all(jnp.abs(row_sums - 1.0) < 1e-4))

    # Compare against pure-JAX reference (loose tol: approx EUP reciprocal in
    # the sigmoid and the ctx=mean(h)@W_att linearity fold shuffle low bits).
    ref = jax.block_until_ready(reference_forward(adj, features, params))
    np.testing.assert_allclose(np.asarray(out), np.asarray(ref),
                               atol=2e-2, rtol=2e-2)

    print("KERNEL_OK")
</pallas_src>

<mosaic_0001>
module attributes {stable_mosaic.version = 11 : i64} {
  func.func @kernel(%arg0: i32, %arg1: memref<1x128x128xf32, #tpu.memory_space<vmem>>, %arg2: memref<128x32xf32, #tpu.memory_space<vmem>>, %arg3: memref<232x64xf32, #tpu.memory_space<vmem>>, %arg4: memref<8x4xf32, #tpu.memory_space<vmem>>) attributes {dimension_semantics = [#tpu.dimension_semantics<parallel>], iteration_bounds = array<i64: 2>, scalar_prefetch = 0 : i64, scratch_operands = 0 : i64, tpu.core_type = #tpu.core_type<tc>, window_params = [{transform_indices = @transform_0, window_bounds = array<i64: 1, 128, 128>}, {transform_indices = @transform_1, window_bounds = array<i64: 128, 32>}, {pipeline_mode = #tpu.pipeline_mode<synchronous>, transform_indices = @transform_2, window_bounds = array<i64: 232, 64>}, {transform_indices = @transform_3, window_bounds = array<i64: 8, 4>}]} {
    %c0 = arith.constant 0 : index
    %c0_0 = arith.constant 0 : index
    %c0_1 = arith.constant 0 : index
    %0 = vector.load %arg1[%c0, %c0_0, %c0_1] : memref<1x128x128xf32, #tpu.memory_space<vmem>>, vector<1x128x128xf32>
    %1 = vector.shape_cast %0 : vector<1x128x128xf32> to vector<128x128xf32>
    %c0_2 = arith.constant 0 : index
    %c0_3 = arith.constant 0 : index
    %2 = vector.load %arg2[%c0_2, %c0_3] : memref<128x32xf32, #tpu.memory_space<vmem>>, vector<128x32xf32>
    %c0_4 = arith.constant 0 : index
    %c0_5 = arith.constant 0 : index
    %3 = vector.load %arg3[%c0_4, %c0_5] : memref<232x64xf32, #tpu.memory_space<vmem>>, vector<32x64xf32>
    %c32 = arith.constant 32 : index
    %c0_6 = arith.constant 0 : index
    %4 = vector.load %arg3[%c32, %c0_6] : memref<232x64xf32, #tpu.memory_space<vmem>>, vector<1x64xf32>
    %cst = arith.constant dense<0.000000e+00> : vector<128x64xf32>
    %5 = tpu.matmul %2, %3, %cst {dimension_numbers = #tpu.dot_dimension_numbers<[1], [0], [0], [1], [0, 0, 1, 1], [], []>} : vector<128x32xf32>, vector<32x64xf32>, vector<128x64xf32> -> vector<128x64xf32>
    %cst_7 = arith.constant dense<0.000000e+00> : vector<128x64xf32>
    %6 = tpu.matmul %1, %5, %cst_7 {dimension_numbers = #tpu.dot_dimension_numbers<[1], [0], [0], [1], [0, 0, 1, 1], [], []>} : vector<128x128xf32>, vector<128x64xf32>, vector<128x64xf32> -> vector<128x64xf32>
    %7 = vector.broadcast %4 : vector<1x64xf32> to vector<128x64xf32>
    %8 = arith.addf %6, %7 : vector<128x64xf32>
    %cst_8 = arith.constant 0.000000e+00 : f32
    %9 = vector.broadcast %cst_8 : f32 to vector<128x64xf32>
    %10 = arith.maximumf %8, %9 : vector<128x64xf32>
    %c33 = arith.constant 33 : index
    %c0_9 = arith.constant 0 : index
    %11 = vector.load %arg3[%c33, %c0_9] : memref<232x64xf32, #tpu.memory_space<vmem>>, vector<64x32xf32>
    %c97 = arith.constant 97 : index
    %c0_10 = arith.constant 0 : index
    %12 = vector.load %arg3[%c97, %c0_10] : memref<232x64xf32, #tpu.memory_space<vmem>>, vector<1x32xf32>
    %cst_11 = arith.constant dense<0.000000e+00> : vector<128x32xf32>
    %13 = tpu.matmul %10, %11, %cst_11 {dimension_numbers = #tpu.dot_dimension_numbers<[1], [0], [0], [1], [0, 0, 1, 1], [], []>} : vector<128x64xf32>, vector<64x32xf32>, vector<128x32xf32> -> vector<128x32xf32>
    %cst_12 = arith.constant dense<0.000000e+00> : vector<128x32xf32>
    %14 = tpu.matmul %1, %13, %cst_12 {dimension_numbers = #tpu.dot_dimension_numbers<[1], [0], [0], [1], [0, 0, 1, 1], [], []>} : vector<128x128xf32>, vector<128x32xf32>, vector<128x32xf32> -> vector<128x32xf32>
    %15 = vector.broadcast %12 : vector<1x32xf32> to vector<128x32xf32>
    %16 = arith.addf %14, %15 : vector<128x32xf32>
    %cst_13 = arith.constant 0.000000e+00 : f32
    %17 = vector.broadcast %cst_13 : f32 to vector<128x32xf32>
    %18 = arith.maximumf %16, %17 : vector<128x32xf32>
    %c98 = arith.constant 98 : index
    %c0_14 = arith.constant 0 : index
    %19 = vector.load %arg3[%c98, %c0_14] : memref<232x64xf32, #tpu.memory_space<vmem>>, vector<32x32xf32>
    %c130 = arith.constant 130 : index
    %c0_15 = arith.constant 0 : index
    %20 = vector.load %arg3[%c130, %c0_15] : memref<232x64xf32, #tpu.memory_space<vmem>>, vector<1x32xf32>
    %cst_16 = arith.constant dense<0.000000e+00> : vector<128x32xf32>
    %21 = tpu.matmul %18, %19, %cst_16 {dimension_numbers = #tpu.dot_dimension_numbers<[1], [0], [0], [1], [0, 0, 1, 1], [], []>} : vector<128x32xf32>, vector<32x32xf32>, vector<128x32xf32> -> vector<128x32xf32>
    %cst_17 = arith.constant dense<0.000000e+00> : vector<128x32xf32>
    %22 = tpu.matmul %1, %21, %cst_17 {dimension_numbers = #tpu.dot_dimension_numbers<[1], [0], [0], [1], [0, 0, 1, 1], [], []>} : vector<128x128xf32>, vector<128x32xf32>, vector<128x32xf32> -> vector<128x32xf32>
    %23 = vector.broadcast %20 : vector<1x32xf32> to vector<128x32xf32>
    %24 = arith.addf %22, %23 : vector<128x32xf32>
    %cst_18 = arith.constant 0.000000e+00 : f32
    %25 = vector.broadcast %cst_18 : f32 to vector<128x32xf32>
    %26 = arith.maximumf %24, %25 : vector<128x32xf32>
    %27 = vector.shape_cast %26 : vector<128x32xf32> to vector<8x16x32xf32>
    %cst_19 = arith.constant dense<0.000000e+00> : vector<8x32xf32>
    %28 = vector.multi_reduction <add>, %27, %cst_19 [1] : vector<8x16x32xf32> to vector<8x32xf32>
    %cst_20 = arith.constant 1.600000e+01 : f32
    %29 = vector.broadcast %cst_20 : f32 to vector<8x32xf32>
    %30 = arith.divf %28, %29 : vector<8x32xf32>
    %c131 = arith.constant 131 : index
    %c0_21 = arith.constant 0 : index
    %31 = vector.load %arg3[%c131, %c0_21] : memref<232x64xf32, #tpu.memory_space<vmem>>, vector<32x32xf32>
    %cst_22 = arith.constant dense<0.000000e+00> : vector<8x32xf32>
    %32 = tpu.matmul %30, %31, %cst_22 {dimension_numbers = #tpu.dot_dimension_numbers<[1], [0], [0], [1], [0, 0, 1, 1], [], []>} : vector<8x32xf32>, vector<32x32xf32>, vector<8x32xf32> -> vector<8x32xf32>
    %33 = math.tanh %32 : vector<8x32xf32>
    %34 = vector.shape_cast %33 : vector<8x32xf32> to vector<8x1x32xf32>
    %35 = vector.broadcast %34 : vector<8x1x32xf32> to vector<8x16x32xf32>
    %36 = arith.mulf %27, %35 : vector<8x16x32xf32>
    %cst_23 = arith.constant dense<0.000000e+00> : vector<8x16xf32>
    %37 = vector.multi_reduction <add>, %36, %cst_23 [2] : vector<8x16x32xf32> to vector<8x16xf32>
    %38 = vector.shape_cast %37 : vector<8x16xf32> to vector<8x16x1xf32>
    %cst_24 = arith.constant 0.000000e+00 : f32
    %39 = vector.broadcast %cst_24 : f32 to vector<8x16x1xf32>
    %40 = arith.subf %39, %38 : vector<8x16x1xf32>
    %41 = math.exp %40 : vector<8x16x1xf32>
    %cst_25 = arith.constant 1.000000e+00 : f32
    %42 = vector.broadcast %cst_25 : f32 to vector<8x16x1xf32>
    %43 = arith.addf %42, %41 : vector<8x16x1xf32>
    %44 = tpu.reciprocal %43 {approx = true} : vector<8x16x1xf32> -> vector<8x16x1xf32>
    %45 = vector.broadcast %44 : vector<8x16x1xf32> to vector<8x16x32xf32>
    %46 = arith.mulf %27, %45 : vector<8x16x32xf32>
    %cst_26 = arith.constant dense<0.000000e+00> : vector<8x32xf32>
    %47 = vector.multi_reduction <add>, %46, %cst_26 [1] : vector<8x16x32xf32> to vector<8x32xf32>
    %c163 = arith.constant 163 : index
    %c0_27 = arith.constant 0 : index
    %48 = vector.load %arg3[%c163, %c0_27] : memref<232x64xf32, #tpu.memory_space<vmem>>, vector<32x32xf32>
    %cst_28 = arith.constant dense<0.000000e+00> : vector<8x32xf32>
    %49 = tpu.matmul %47, %48, %cst_28 {dimension_numbers = #tpu.dot_dimension_numbers<[1], [0], [0], [1], [0, 0, 1, 1], [], []>} : vector<8x32xf32>, vector<32x32xf32>, vector<8x32xf32> -> vector<8x32xf32>
    %c195 = arith.constant 195 : index
    %c0_29 = arith.constant 0 : index
    %50 = vector.load %arg3[%c195, %c0_29] : memref<232x64xf32, #tpu.memory_space<vmem>>, vector<1x32xf32>
    %51 = vector.broadcast %50 : vector<1x32xf32> to vector<8x32xf32>
    %52 = arith.addf %49, %51 : vector<8x32xf32>
    %cst_30 = arith.constant 0.000000e+00 : f32
    %53 = vector.broadcast %cst_30 : f32 to vector<8x32xf32>
    %54 = arith.maximumf %52, %53 : vector<8x32xf32>
    %c196 = arith.constant 196 : index
    %c0_31 = arith.constant 0 : index
    %55 = vector.load %arg3[%c196, %c0_31] : memref<232x64xf32, #tpu.memory_space<vmem>>, vector<32x4xf32>
    %cst_32 = arith.constant dense<0.000000e+00> : vector<8x4xf32>
    %56 = tpu.matmul %54, %55, %cst_32 {dimension_numbers = #tpu.dot_dimension_numbers<[1], [0], [0], [1], [0, 0, 1, 1], [], []>} : vector<8x32xf32>, vector<32x4xf32>, vector<8x4xf32> -> vector<8x4xf32>
    %c228 = arith.constant 228 : index
    %c0_33 = arith.constant 0 : index
    %57 = vector.load %arg3[%c228, %c0_33] : memref<232x64xf32, #tpu.memory_space<vmem>>, vector<1x4xf32>
    %58 = vector.broadcast %57 : vector<1x4xf32> to vector<8x4xf32>
    %59 = arith.addf %56, %58 : vector<8x4xf32>
    %cst_34 = arith.constant dense<0xFF800000> : vector<8xf32>
    %60 = vector.multi_reduction <maximumf>, %59, %cst_34 [1] : vector<8x4xf32> to vector<8xf32>
    %61 = vector.shape_cast %60 : vector<8xf32> to vector<8x1xf32>
    %62 = vector.broadcast %61 : vector<8x1xf32> to vector<8x4xf32>
    %63 = arith.subf %59, %62 : vector<8x4xf32>
    %64 = math.exp %63 : vector<8x4xf32>
    %cst_35 = arith.constant dense<0.000000e+00> : vector<8xf32>
    %65 = vector.multi_reduction <add>, %64, %cst_35 [1] : vector<8x4xf32> to vector<8xf32>
    %66 = vector.shape_cast %65 : vector<8xf32> to vector<8x1xf32>
    %67 = math.log %66 : vector<8x1xf32>
    %68 = vector.broadcast %67 : vector<8x1xf32> to vector<8x4xf32>
    %69 = arith.subf %63, %68 : vector<8x4xf32>
    %c0_36 = arith.constant 0 : index
    %c0_37 = arith.constant 0 : index
    %70 = vector.load %arg4[%c0_36, %c0_37] : memref<8x4xf32, #tpu.memory_space<vmem>>, vector<8x4xf32>
    tpu.vector_store %arg4[%c0_36, %c0_37], %69 {strides = array<i32>} : memref<8x4xf32, #tpu.memory_space<vmem>>, vector<8x4xf32>,
    return
  }
  func.func @transform_0(%arg0: i32) -> (i32, i32, i32) {
    %c0_i32 = arith.constant 0 : i32
    %c0_i32_0 = arith.constant 0 : i32
    %c0_i32_1 = arith.constant 0 : i32
    return %arg0, %c0_i32, %c0_i32_0 : i32, i32, i32
  }
  func.func @transform_1(%arg0: i32) -> (i32, i32) {
    %c0_i32 = arith.constant 0 : i32
    %c0_i32_0 = arith.constant 0 : i32
    return %arg0, %c0_i32 : i32, i32
  }
  func.func @transform_2(%arg0: i32) -> (i32, i32) {
    %c0_i32 = arith.constant 0 : i32
    %c0_i32_0 = arith.constant 0 : i32
    %c0_i32_1 = arith.constant 0 : i32
    return %c0_i32, %c0_i32_0 : i32, i32
  }
  func.func @transform_3(%arg0: i32) -> (i32, i32) {
    %c0_i32 = arith.constant 0 : i32
    %c0_i32_0 = arith.constant 0 : i32
    return %arg0, %c0_i32 : i32, i32
  }
}

</mosaic_0001>

<bundles_post_ra>
// kernel: tpu_custom_call.1
= control target key start
LH: loop header
LB: loop body
LE: loop exit
PB: predicated region body
PF: predicated region fallthrough
CT: control target
= control target key end

     0   :  { %s2887_s12 = smov 0   ;;  %s3357_s0 = inlined_call_operand.vmem [shape: f32[2,128,128], index: 0, kind: input, shape index: {}]   ;;  %s3358_s1 = inlined_call_operand.vmem [shape: f32[256,32], index: 1, kind: input, shape index: {}]   ;;  %s3359_s2 = inlined_call_operand.vmem [shape: f32[232,64], index: 2, kind: input, shape index: {}]   ;;  %s3360_s3 = inlined_call_operand.vmem [shape: f32[16,4], index: 3, kind: output, shape index: {}]  }
   0x1 LB: > { %s2893_s13 = sadd.s32 4294967295, %s2861_s12   ;;  %p2082_p0 = scmp.ge.s32.totalorder %s2861_s12, 1  ;;  %s2861_s12 = sphi %s2887_s12, %s13_s12  }
   0x2   : > { %p148_p1 = scmp.lt.s32.totalorder %s2861_s12, 3 }
   0x4   : > { %p149_p2 = pnand %p2082_p0, %p148_p1 }
   0x5   : > { %v223_v0 = vld [vmem:[%s3359_s2] sm:$0xff] (!%p149_p2)  ;;  %v224_v1 = vld [vmem:[%s3359_s2 + $0x8] sm:$0xff] (!%p149_p2)  ;;  %v225_v2 = vld [vmem:[%s3359_s2 + $0x10] sm:$0xff] (!%p149_p2)  ;;  %s2085_s20 = sshll.u32 (!%p149_p2), %s2893_s13, 4  ;;  %vm228_vm0 = vcmask (!%p149_p2), 261120   ;;  %p176_p4 = scmp.lt.s32.totalorder (!%p149_p2), %s2893_s13, 1 }
   0x6   : > { %152 = sbr.rel (%p149_p2) target bundleno = 2657 (0xa61), region = 32  ;;  %v2627_v3 = vpack.c.bf16 (!%p149_p2), %v224_v1, %v223_v0  ;;  %v226_v4 = vld [vmem:[%s3359_s2 + $0x18] sm:$0xff] (!%p149_p2)  ;;  %p182_p3 = scmp.lt.s32.totalorder (!%p149_p2), %s2085_s20, 31  ;;  %v587_v23 = vld [vmem:[%s3359_s2 + $0x21] sm:$0xff] (!%p149_p2)  ;;  %v588_v24 = vld [vmem:[%s3359_s2 + $0x29] sm:$0xff] (!%p149_p2)  ;;  %vm596_vm1 = vcmask (!%p149_p2), 523264  }
   0x7   : > { %v2631_v5 = vpack.c.bf16 (!%p149_p2), %v226_v4, %v225_v2  ;;  %v589_v25 = vld [vmem:[%s3359_s2 + $0x31] sm:$0xff] (!%p149_p2)  ;;  %v2667_v26 = vpack.c.bf16 (!%p149_p2), %v588_v24, %v587_v23  ;;  %v590_v27 = vld [vmem:[%s3359_s2 + $0x39] sm:$0xff] (!%p149_p2)  ;;  %v591_v29 = vld [vmem:[%s3359_s2 + $0x41] sm:$0xff] (!%p149_p2)  ;;  %vm2864_vm2 = vmmov (!%p149_p2), 0   ;;  %vm1411_vm3 = vcmask (!%p149_p2), 1041409  }
   0x8   : > { %2628 = vmatprep.subr.bf16.mxu0 (!%p149_p2), %v2627_v3  ;;  %v2671_v28 = vpack.c.bf16 (!%p149_p2), %v590_v27, %v589_v25  ;;  %v592_v30 = vld [vmem:[%s3359_s2 + $0x49] sm:$0xff] (!%p149_p2)  ;;  %v593_v32 = vld [vmem:[%s3359_s2 + $0x51] sm:$0xff] (!%p149_p2)  ;;  %v594_v33 = vld [vmem:[%s3359_s2 + $0x59] sm:$0xff] (!%p149_p2)  ;;  %vm1413_vm4 = vcmask (!%p149_p2), 1042434   ;;  %vm1415_vm5 = vcmask (!%p149_p2), 1043459   ;;  %vm1417_vm6 = vcmask (!%p149_p2), 1044484  }
   0x9   : > { %2630 = vmatpush3.bf16.msra.mxu0 (!%p149_p2), %v2627_v3  ;;  %v2675_v31 = vpack.c.bf16 (!%p149_p2), %v592_v30, %v591_v29  ;;  %v2679_v34 = vpack.c.bf16 (!%p149_p2), %v594_v33, %v593_v32  ;;  %vm1419_vm7 = vcmask (!%p149_p2), 1045509   ;;  %vm1421_vm8 = vcmask (!%p149_p2), 1046534  }
   0xa   : > { %2632 = vmatprep.subr.bf16.mxu0 (!%p149_p2), %v2631_v5  ;;  %vm1423_vm9 = vcmask (!%p149_p2), 1047559   ;;  %vm1999_vm10 = vcmask (!%p149_p2), 31744  }
   0xd   : > { %s3362_s20 = smov (!%p182_p3, %s2085_s20), 31  ;;  %2634 = vmatpush3.bf16.msra.mxu0 %v2631_v5  ;;  %s3364_s13 = smov (!%p176_p4, %s2893_s13), 1 }
   0xe   : > { %s2086_s23 = sshll.u32 %s3362_s20, 3  ;;  %s2146_s27 = sshll.u32 %s3364_s13, 7  ;;  %2668 = vmatprep.subr.bf16.mxu0 %v2667_v26 }
   0xf   : > { %s2913_s26 = scalar_lea.vmem %s3358_s1, %s2086_s23  ;;  %s2955_s30 = scalar_lea.vmem %s3357_s0, %s2146_s27 }
  0x10   : > { %v207_v6 = vld [vmem:[%s2913_s26] sm:$0xff]  ;;  %v208_v7 = vld [vmem:[%s2913_s26 + $0x8] sm:$0xff]  ;;  %v209_v8 = vld [vmem:[%s2913_s26 + $0x10] sm:$0xff]  ;;  %s2087_s14 = sshll.u32 %s3364_s13, 3 }
  0x11   : > { %2330 = vmatprep.mubr.msk.f32.mxu0 %vm228_vm0, %v207_v6  ;;  %v210_v9 = vld [vmem:[%s2913_s26 + $0x18] sm:$0xff]  ;;  %v211_v10 = vld [vmem:[%s2913_s26 + $0x20] sm:$0xff]  ;;  %v212_v11 = vld [vmem:[%s2913_s26 + $0x28] sm:$0xff]  ;;  %s190_s17 = scalar_lea.vmem %s3360_s3, %s2087_s14 }
  0x12   : > { %2331 = vmatmul.mubr.msk.f32.vlgmr.msra.gmra.mrb[0].mxu0 %vm228_vm0, %v208_v7  ;;  %v213_v12 = vld [vmem:[%s2913_s26 + $0x30] sm:$0xff]  ;;  %v214_v13 = vld [vmem:[%s2913_s26 + $0x38] sm:$0xff]  ;;  %v215_v14 = vld [vmem:[%s2913_s26 + $0x40] sm:$0xff] }
  0x13   : > { %2333 = vmatprep.mubr.msk.f32.mxu0 %vm228_vm0, %v209_v8  ;;  %v216_v15 = vld [vmem:[%s2913_s26 + $0x48] sm:$0xff]  ;;  %v217_v16 = vld [vmem:[%s2913_s26 + $0x50] sm:$0xff]  ;;  %v218_v17 = vld [vmem:[%s2913_s26 + $0x58] sm:$0xff]  ;;  %2670 = vmatpush3.bf16.msra.mxu0 %v2667_v26 }
  0x14   : > { %v219_v18 = vld [vmem:[%s2913_s26 + $0x60] sm:$0xff]  ;;  %v220_v19 = vld [vmem:[%s2913_s26 + $0x68] sm:$0xff]  ;;  %v221_v20 = vld [vmem:[%s2913_s26 + $0x70] sm:$0xff]  ;;  %2672 = vmatprep.subr.bf16.mxu0 %v2671_v28 }
  0x15   : > { %v222_v21 = vld [vmem:[%s2913_s26 + $0x78] sm:$0xff]  ;;  %v2958_v22 = vld [vmem:[%s2955_s30] sm:$0xff]  ;;  %v2986_v59 = vld [vmem:[%s2955_s30 + $0x8] sm:$0xff] }
  0x16   : > { %2334 = vmatmul.mubr.msk.f32.gmra.mrb[2].mxu0 %vm228_vm0, %v210_v9  ;;  %2386 = vmatprep.mubr.f32.mxu1 %v2958_v22  ;;  %v2989_v60 = vld [vmem:[%s2955_s30 + $0x10] sm:$0xff]  ;;  %v2994_v61 = vld [vmem:[%s2955_s30 + $0x18] sm:$0xff]  ;;  %v2997_v62 = vld [vmem:[%s2955_s30 + $0x20] sm:$0xff] }
  0x17   : > { %2336 = vmatprep.mubr.msk.f32.mxu0 %vm228_vm0, %v211_v10  ;;  %2674 = vmatpush3.bf16.msra.mxu0 %v2671_v28  ;;  %v3002_v63 = vld [vmem:[%s2955_s30 + $0x28] sm:$0xff]  ;;  %v3005_v0 = vld [vmem:[%s2955_s30 + $0x30] sm:$0xff]  ;;  %v3010_v1 = vld [vmem:[%s2955_s30 + $0x38] sm:$0xff] }
  0x18   : > { %2676 = vmatprep.subr.bf16.mxu0 %v2675_v31  ;;  %v3013_v2 = vld [vmem:[%s2955_s30 + $0x40] sm:$0xff]  ;;  %v3018_v3 = vld [vmem:[%s2955_s30 + $0x48] sm:$0xff]  ;;  %v3021_v4 = vld [vmem:[%s2955_s30 + $0x50] sm:$0xff] }
  0x19   : > { %v3026_v5 = vld [vmem:[%s2955_s30 + $0x58] sm:$0xff]  ;;  %v3029_v6 = vld [vmem:[%s2955_s30 + $0x60] sm:$0xff]  ;;  %v3034_v7 = vld [vmem:[%s2955_s30 + $0x68] sm:$0xff] }
  0x1a   : > { %2337 = vmatmul.mubr.msk.f32.gmra.mrb[4].mxu0 %vm228_vm0, %v212_v11  ;;  %v3037_v8 = vld [vmem:[%s2955_s30 + $0x70] sm:$0xff]  ;;  %v3042_v9 = vld [vmem:[%s2955_s30 + $0x78] sm:$0xff]  ;;  %v2104_v10 = vld [vmem:[%s3359_s2 + $0x20] ss:$0 sm:$0xff] }
  0x1b   : > { %2339 = vmatprep.mubr.msk.f32.mxu0 %vm228_vm0, %v213_v12  ;;  %2678 = vmatpush3.bf16.msra.mxu0 %v2675_v31 }
  0x1c   : > { %2680 = vmatprep.subr.bf16.mxu0 %v2679_v34 }
  0x1e   : > { %2340 = vmatmul.mubr.msk.f32.gmra.mrb[6].mxu0 %vm228_vm0, %v214_v13 }
  0x1f   : > { %2342 = vmatprep.mubr.msk.f32.mxu0 %vm228_vm0, %v215_v14  ;;  %2682 = vmatpush3.bf16.msra.mxu0 %v2679_v34 }
  0x22   : > { %2343 = vmatmul.mubr.msk.f32.gmra.mrb[8].mxu0 %vm228_vm0, %v216_v15 }
  0x23   : > { %2345 = vmatprep.mubr.msk.f32.mxu0 %vm228_vm0, %v217_v16 }
  0x26   : > { %2346 = vmatmul.mubr.msk.f32.gmra.mrb[10].mxu0 %vm228_vm0, %v218_v17 }
  0x27   : > { %2348 = vmatprep.mubr.msk.f32.mxu0 %vm228_vm0, %v219_v18 }
  0x2a   : > { %2349 = vmatmul.mubr.msk.f32.gmra.mrb[12].mxu0 %vm228_vm0, %v220_v19 }
  0x2b   : > { %2351 = vmatprep.mubr.msk.f32.mxu0 %vm228_vm0, %v221_v20 }
  0x2e   : > { %2352 = vmatmul.mubr.msk.f32.gmra.mrb[14].mxu0 %vm228_vm0, %v222_v21 }
  0xe5   : > { %v2332_v35 = vpop.f32.mrb[0].mxu0 }
  0xe6   : > { %v343_v36 = vpop.f32.mrb[1].mxu0 }
  0xe7   : > { %v2635_v37 = vpack.c.bf16 %v2332_v35, %v343_v36 }
  0xe9   : > { %v2335_v38 = vpop.f32.mrb[2].mxu0  ;;  %2636 = vmatprep.subr.bf16.mxu1 %v2635_v37 }
  0xea   : > { %v353_v39 = vpop.f32.mrb[3].mxu0  ;;  %2638 = vmatpush3.bf16.msra.mxu1 %v2635_v37 }
  0xeb   : > { %v2639_v40 = vpack.c.bf16 %v2335_v38, %v353_v39 }
  0xed   : > { %v2338_v41 = vpop.f32.mrb[4].mxu0  ;;  %2640 = vmatprep.subr.bf16.mxu1 %v2639_v40 }
  0xee   : > { %v363_v42 = vpop.f32.mrb[5].mxu0  ;;  %2642 = vmatpush3.bf16.msra.mxu1 %v2639_v40 }
  0xef   : > { %v2643_v43 = vpack.c.bf16 %v2338_v41, %v363_v42 }
  0xf1   : > { %v2341_v44 = vpop.f32.mrb[6].mxu0  ;;  %2644 = vmatprep.subr.bf16.mxu1 %v2643_v43 }
  0xf2   : > { %v373_v45 = vpop.f32.mrb[7].mxu0  ;;  %2646 = vmatpush3.bf16.msra.mxu1 %v2643_v43 }
  0xf3   : > { %v2647_v46 = vpack.c.bf16 %v2341_v44, %v373_v45 }
  0xf5   : > { %v2344_v47 = vpop.f32.mrb[8].mxu0  ;;  %2648 = vmatprep.subr.bf16.mxu1 %v2647_v46 }
  0xf6   : > { %v383_v48 = vpop.f32.mrb[9].mxu0  ;;  %2650 = vmatpush3.bf16.msra.mxu1 %v2647_v46 }
  0xf7   : > { %v2651_v49 = vpack.c.bf16 %v2344_v47, %v383_v48 }
  0xf9   : > { %v2347_v50 = vpop.f32.mrb[10].mxu0  ;;  %2652 = vmatprep.subr.bf16.mxu1 %v2651_v49 }
  0xfa   : > { %v393_v51 = vpop.f32.mrb[11].mxu0  ;;  %2654 = vmatpush3.bf16.msra.mxu1 %v2651_v49 }
  0xfb   : > { %v2655_v52 = vpack.c.bf16 %v2347_v50, %v393_v51 }
  0xfd   : > { %v2350_v53 = vpop.f32.mrb[12].mxu0  ;;  %2656 = vmatprep.subr.bf16.mxu1 %v2655_v52 }
  0xfe   : > { %v403_v54 = vpop.f32.mrb[13].mxu0  ;;  %2658 = vmatpush3.bf16.msra.mxu1 %v2655_v52 }
  0xff   : > { %v2659_v55 = vpack.c.bf16 %v2350_v53, %v403_v54 }
 0x101   : > { %v2353_v56 = vpop.f32.mrb[14].mxu0  ;;  %2660 = vmatprep.subr.bf16.mxu1 %v2659_v55 }
 0x102   : > { %v413_v57 = vpop.f32.mrb[15].mxu0  ;;  %2662 = vmatpush3.bf16.msra.mxu1 %v2659_v55 }
 0x103   : > { %v2663_v58 = vpack.c.bf16 %v2353_v56, %v413_v57 }
 0x105   : > { %2664 = vmatprep.subr.bf16.mxu1 %v2663_v58 }
 0x106   : > { %2666 = vmatpush3.bf16.msra.mxu1 %v2663_v58 }
 0x109   : > { %2387 = vmatmul.mubr.f32.vlgmr.msra.gmra.mrb[0].mxu1 %v2986_v59 }
 0x10a   : > { %2389 = vmatprep.mubr.f32.mxu1 %v2989_v60 }
 0x10d   : > { %2390 = vmatmul.mubr.f32.gmra.mrb[2].mxu1 %v2994_v61 }
 0x10e   : > { %2392 = vmatprep.mubr.f32.mxu1 %v2997_v62 }
 0x111   : > { %2393 = vmatmul.mubr.f32.gmra.mrb[4].mxu1 %v3002_v63 }
 0x112   : > { %2395 = vmatprep.mubr.f32.mxu1 %v3005_v0 }
 0x115   : > { %2396 = vmatmul.mubr.f32.gmra.mrb[6].mxu1 %v3010_v1 }
 0x116   : > { %2398 = vmatprep.mubr.f32.mxu1 %v3013_v2 }
 0x119   : > { %2399 = vmatmul.mubr.f32.gmra.mrb[8].mxu1 %v3018_v3 }
 0x11a   : > { %2401 = vmatprep.mubr.f32.mxu1 %v3021_v4 }
 0x11d   : > { %2402 = vmatmul.mubr.f32.gmra.mrb[10].mxu1 %v3026_v5 }
 0x11e   : > { %2404 = vmatprep.mubr.f32.mxu1 %v3029_v6 }
 0x121   : > { %2405 = vmatmul.mubr.f32.gmra.mrb[12].mxu1 %v3034_v7 }
 0x122   : > { %2407 = vmatprep.mubr.f32.mxu1 %v3037_v8 }
 0x125   : > { %2408 = vmatmul.mubr.f32.gmra.mrb[14].mxu1 %v3042_v9 }
 0x126   : > { %2482 = vmatprep.mubr.f32.mxu1 %v2958_v22 }
 0x1dc   : > { %v2388_v11 = vpop.f32.mrb[0].mxu1 }
 0x1dd   : > { %v498_v12 = vadd.f32 %v2388_v11, %v2104_v10  ;;  %v492_v13 = vpop.f32.mrb[1].mxu1 }
 0x1de   : > { %v493_v14 = vadd.f32 %v2104_v10, %v492_v13  ;;  %v956_v13 = vld [vmem:[%s3359_s2 + $0x6a] sm:$0xff] }
 0x1df   : > { %v572_v17 = vmax.f32 %v498_v12, 0.0  ;;  %v955_v12 = vld [vmem:[%s3359_s2 + $0x62] sm:$0xff] }
 0x1e0   : > { %v571_v15 = vmax.f32 %v493_v14, 0.0  ;;  %v2391_v16 = vpop.f32.mrb[2].mxu1  ;;  %v2715_v14 = vpack.c.bf16 %v956_v13, %v955_v12 }
 0x1e1   : > { %v508_v18 = vadd.f32 %v2391_v16, %v2104_v10  ;;  %v502_v19 = vpop.f32.mrb[3].mxu1 }
 0x1e2   : > { %v503_v20 = vadd.f32 %v2104_v10, %v502_v19  ;;  %2426 = vmatprep.mubr.msk.f32.mxu0 %vm596_vm1, %v571_v15  ;;  %v958_v15 = vld [vmem:[%s3359_s2 + $0x7a] sm:$0xff]  ;;  %2716 = vmatprep.subr.bf16.mxu0 %v2715_v14 }
 0x1e3   : > { %2427 = vmatmul.mubr.msk.f32.vlgmr.msra.gmra.mrb[16].mxu0 %vm596_vm1, %v572_v17  ;;  %v574_v24 = vmax.f32 %v508_v18, 0.0 }
 0x1e4   : > { %v573_v21 = vmax.f32 %v503_v20, 0.0  ;;  %v2394_v23 = vpop.f32.mrb[4].mxu1  ;;  %2718 = vmatpush3.bf16.msra.mxu0 %v2715_v14 }
 0x1e5   : > { %v518_v25 = vadd.f32 %v2394_v23, %v2104_v10  ;;  %v512_v26 = vpop.f32.mrb[5].mxu1 }
 0x1e6   : > { %v513_v27 = vadd.f32 %v2104_v10, %v512_v26  ;;  %2429 = vmatprep.mubr.msk.f32.mxu0 %vm596_vm1, %v573_v21 }
 0x1e7   : > { %2430 = vmatmul.mubr.msk.f32.gmra.mrb[18].mxu0 %vm596_vm1, %v574_v24  ;;  %v576_v30 = vmax.f32 %v518_v25, 0.0 }
 0x1e8   : > { %v575_v28 = vmax.f32 %v513_v27, 0.0  ;;  %v2397_v29 = vpop.f32.mrb[6].mxu1 }
 0x1e9   : > { %v528_v31 = vadd.f32 %v2397_v29, %v2104_v10  ;;  %v522_v32 = vpop.f32.mrb[7].mxu1 }
 0x1ea   : > { %v523_v33 = vadd.f32 %v2104_v10, %v522_v32  ;;  %2432 = vmatprep.mubr.msk.f32.mxu0 %vm596_vm1, %v575_v28 }
 0x1eb   : > { %2433 = vmatmul.mubr.msk.f32.gmra.mrb[20].mxu0 %vm596_vm1, %v576_v30  ;;  %v578_v36 = vmax.f32 %v528_v31, 0.0 }
 0x1ec   : > { %v577_v34 = vmax.f32 %v523_v33, 0.0  ;;  %v2400_v35 = vpop.f32.mrb[8].mxu1 }
 0x1ed   : > { %v538_v37 = vadd.f32 %v2400_v35, %v2104_v10  ;;  %v532_v38 = vpop.f32.mrb[9].mxu1 }
 0x1ee   : > { %v533_v39 = vadd.f32 %v2104_v10, %v532_v38  ;;  %2435 = vmatprep.mubr.msk.f32.mxu0 %vm596_vm1, %v577_v34 }
 0x1ef   : > { %2436 = vmatmul.mubr.msk.f32.gmra.mrb[22].mxu0 %vm596_vm1, %v578_v36  ;;  %v580_v42 = vmax.f32 %v538_v37, 0.0 }
 0x1f0   : > { %v579_v40 = vmax.f32 %v533_v39, 0.0  ;;  %v2403_v41 = vpop.f32.mrb[10].mxu1 }
 0x1f1   : > { %v548_v43 = vadd.f32 %v2403_v41, %v2104_v10  ;;  %v542_v44 = vpop.f32.mrb[11].mxu1 }
 0x1f2   : > { %v543_v45 = vadd.f32 %v2104_v10, %v542_v44  ;;  %2438 = vmatprep.mubr.msk.f32.mxu0 %vm596_vm1, %v579_v40 }
 0x1f3   : > { %2439 = vmatmul.mubr.msk.f32.gmra.mrb[24].mxu0 %vm596_vm1, %v580_v42  ;;  %v582_v48 = vmax.f32 %v548_v43, 0.0  ;;  %v2121_v42 = vld [vmem:[%s3359_s2 + $0x61] ss:$0 sm:$0xff] }
 0x1f4   : > { %v581_v46 = vmax.f32 %v543_v45, 0.0  ;;  %v2406_v47 = vpop.f32.mrb[12].mxu1 }
 0x1f5   : > { %v558_v49 = vadd.f32 %v2406_v47, %v2104_v10  ;;  %v552_v50 = vpop.f32.mrb[13].mxu1 }
 0x1f6   : > { %v553_v51 = vadd.f32 %v2104_v10, %v552_v50  ;;  %2441 = vmatprep.mubr.msk.f32.mxu0 %vm596_vm1, %v581_v46 }
 0x1f7   : > { %2442 = vmatmul.mubr.msk.f32.gmra.mrb[26].mxu0 %vm596_vm1, %v582_v48  ;;  %v584_v54 = vmax.f32 %v558_v49, 0.0 }
 0x1f8   : > { %v583_v52 = vmax.f32 %v553_v51, 0.0  ;;  %v2409_v53 = vpop.f32.mrb[14].mxu1 }
 0x1f9   : > { %v568_v55 = vadd.f32 %v2409_v53, %v2104_v10  ;;  %v562_v56 = vpop.f32.mrb[15].mxu1 }
 0x1fa   : > { %v563_v57 = vadd.f32 %v2104_v10, %v562_v56  ;;  %2444 = vmatprep.mubr.msk.f32.mxu0 %vm596_vm1, %v583_v52  ;;  %v957_v10 = vld [vmem:[%s3359_s2 + $0x72] sm:$0xff] }
 0x1fb   : > { %2445 = vmatmul.mubr.msk.f32.gmra.mrb[28].mxu0 %vm596_vm1, %v584_v54  ;;  %v586_v11 = vmax.f32 %v568_v55, 0.0  ;;  %v2719_v16 = vpack.c.bf16 %v958_v15, %v957_v10 }
 0x1fc   : > { %v585_v58 = vmax.f32 %v563_v57, 0.0 }
 0x1fd   : > { %2720 = vmatprep.subr.bf16.mxu0 %v2719_v16 }
 0x1fe   : > { %2447 = vmatprep.mubr.msk.f32.mxu0 %vm596_vm1, %v585_v58  ;;  %2722 = vmatpush3.bf16.msra.mxu0 %v2719_v16 }
 0x1ff   : > { %2448 = vmatmul.mubr.msk.f32.gmra.mrb[30].mxu0 %vm596_vm1, %v586_v11 }
 0x2b6   : > { %v2428_v17 = vpop.f32.mrb[16].mxu0 }
 0x2b7   : > { %v711_v18 = vpop.f32.mrb[17].mxu0 }
 0x2b8   : > { %v2683_v19 = vpack.c.bf16 %v2428_v17, %v711_v18 }
 0x2ba   : > { %v2431_v20 = vpop.f32.mrb[18].mxu0  ;;  %2684 = vmatprep.subr.bf16.mxu1 %v2683_v19 }
 0x2bb   : > { %v721_v21 = vpop.f32.mrb[19].mxu0  ;;  %2686 = vmatpush3.bf16.msra.mxu1 %v2683_v19 }
 0x2bc   : > { %v2687_v23 = vpack.c.bf16 %v2431_v20, %v721_v21 }
 0x2be   : > { %v2434_v24 = vpop.f32.mrb[20].mxu0  ;;  %2688 = vmatprep.subr.bf16.mxu1 %v2687_v23 }
 0x2bf   : > { %v731_v25 = vpop.f32.mrb[21].mxu0  ;;  %2690 = vmatpush3.bf16.msra.mxu1 %v2687_v23 }
 0x2c0   : > { %v2691_v26 = vpack.c.bf16 %v2434_v24, %v731_v25 }
 0x2c2   : > { %v2437_v27 = vpop.f32.mrb[22].mxu0  ;;  %2692 = vmatprep.subr.bf16.mxu1 %v2691_v26 }
 0x2c3   : > { %v741_v28 = vpop.f32.mrb[23].mxu0  ;;  %2694 = vmatpush3.bf16.msra.mxu1 %v2691_v26 }
 0x2c4   : > { %v2695_v29 = vpack.c.bf16 %v2437_v27, %v741_v28 }
 0x2c6   : > { %v2440_v30 = vpop.f32.mrb[24].mxu0  ;;  %2696 = vmatprep.subr.bf16.mxu1 %v2695_v29 }
 0x2c7   : > { %v751_v31 = vpop.f32.mrb[25].mxu0  ;;  %2698 = vmatpush3.bf16.msra.mxu1 %v2695_v29 }
 0x2c8   : > { %v2699_v32 = vpack.c.bf16 %v2440_v30, %v751_v31 }
 0x2ca   : > { %v2443_v33 = vpop.f32.mrb[26].mxu0  ;;  %2700 = vmatprep.subr.bf16.mxu1 %v2699_v32 }
 0x2cb   : > { %v761_v34 = vpop.f32.mrb[27].mxu0  ;;  %2702 = vmatpush3.bf16.msra.mxu1 %v2699_v32 }
 0x2cc   : > { %v2703_v35 = vpack.c.bf16 %v2443_v33, %v761_v34 }
 0x2ce   : > { %v2446_v36 = vpop.f32.mrb[28].mxu0  ;;  %2704 = vmatprep.subr.bf16.mxu1 %v2703_v35 }
 0x2cf   : > { %v771_v37 = vpop.f32.mrb[29].mxu0  ;;  %2706 = vmatpush3.bf16.msra.mxu1 %v2703_v35 }
 0x2d0   : > { %v2707_v38 = vpack.c.bf16 %v2446_v36, %v771_v37 }
 0x2d2   : > { %v2449_v39 = vpop.f32.mrb[30].mxu0  ;;  %2708 = vmatprep.subr.bf16.mxu1 %v2707_v38 }
 0x2d3   : > { %v781_v40 = vpop.f32.mrb[31].mxu0  ;;  %2710 = vmatpush3.bf16.msra.mxu1 %v2707_v38 }
 0x2d4   : > { %v2711_v41 = vpack.c.bf16 %v2449_v39, %v781_v40 }
 0x2d6   : > { %2712 = vmatprep.subr.bf16.mxu1 %v2711_v41 }
 0x2d7   : > { %2714 = vmatpush3.bf16.msra.mxu1 %v2711_v41 }
 0x2da   : > { %2483 = vmatmul.mubr.f32.vlgmr.msra.gmra.mrb[16].mxu1 %v2986_v59 }
 0x2db   : > { %2485 = vmatprep.mubr.f32.mxu1 %v2989_v60 }
 0x2de   : > { %2486 = vmatmul.mubr.f32.gmra.mrb[18].mxu1 %v2994_v61 }
 0x2df   : > { %2488 = vmatprep.mubr.f32.mxu1 %v2997_v62 }
 0x2e2   : > { %2489 = vmatmul.mubr.f32.gmra.mrb[20].mxu1 %v3002_v63 }
 0x2e3   : > { %2491 = vmatprep.mubr.f32.mxu1 %v3005_v0 }
 0x2e6   : > { %2492 = vmatmul.mubr.f32.gmra.mrb[22].mxu1 %v3010_v1 }
 0x2e7   : > { %2494 = vmatprep.mubr.f32.mxu1 %v3013_v2 }
 0x2ea   : > { %2495 = vmatmul.mubr.f32.gmra.mrb[24].mxu1 %v3018_v3 }
 0x2eb   : > { %2497 = vmatprep.mubr.f32.mxu1 %v3021_v4 }
 0x2ee   : > { %2498 = vmatmul.mubr.f32.gmra.mrb[26].mxu1 %v3026_v5 }
 0x2ef   : > { %2500 = vmatprep.mubr.f32.mxu1 %v3029_v6 }
 0x2f2   : > { %2501 = vmatmul.mubr.f32.gmra.mrb[28].mxu1 %v3034_v7 }
 0x2f3   : > { %2503 = vmatprep.mubr.f32.mxu1 %v3037_v8 }
 0x2f6   : > { %2504 = vmatmul.mubr.f32.gmra.mrb[30].mxu1 %v3042_v9 }
 0x2f7   : > { %2570 = vmatprep.mubr.f32.mxu1 %v2958_v22 }
 0x3ad   : > { %v2484_v43 = vpop.f32.mrb[16].mxu1 }
 0x3ae   : > { %v866_v44 = vadd.f32 %v2484_v43, %v2121_v42  ;;  %v860_v45 = vpop.f32.mrb[17].mxu1 }
 0x3af   : > { %v861_v46 = vadd.f32 %v2121_v42, %v860_v45 }
 0x3b0   : > { %v940_v49 = vmax.f32 %v866_v44, 0.0 }
 0x3b1   : > { %v939_v47 = vmax.f32 %v861_v46, 0.0  ;;  %v2487_v48 = vpop.f32.mrb[18].mxu1 }
 0x3b2   : > { %v876_v50 = vadd.f32 %v2487_v48, %v2121_v42  ;;  %v870_v51 = vpop.f32.mrb[19].mxu1 }
 0x3b3   : > { %v871_v52 = vadd.f32 %v2121_v42, %v870_v51  ;;  %2514 = vmatprep.mubr.msk.f32.mxu0 %vm228_vm0, %v939_v47 }
 0x3b4   : > { %2515 = vmatmul.mubr.msk.f32.vlgmr.msra.gmra.mrb[32].mxu0 %vm228_vm0, %v940_v49  ;;  %v942_v54 = vmax.f32 %v876_v50, 0.0 }
 0x3b5   : > { %v941_v53 = vmax.f32 %v871_v52, 0.0  ;;  %v2490_v22 = vpop.f32.mrb[20].mxu1 }
 0x3b6   : > { %v886_v55 = vadd.f32 %v2490_v22, %v2121_v42  ;;  %v880_v56 = vpop.f32.mrb[21].mxu1 }
 0x3b7   : > { %v881_v57 = vadd.f32 %v2121_v42, %v880_v56  ;;  %2517 = vmatprep.mubr.msk.f32.mxu0 %vm228_vm0, %v941_v53 }
 0x3b8   : > { %2518 = vmatmul.mubr.msk.f32.gmra.mrb[34].mxu0 %vm228_vm0, %v942_v54  ;;  %v944_v12 = vmax.f32 %v886_v55, 0.0 }
 0x3b9   : > { %v943_v58 = vmax.f32 %v881_v57, 0.0  ;;  %v2493_v11 = vpop.f32.mrb[22].mxu1 }
 0x3ba   : > { %v896_v13 = vadd.f32 %v2493_v11, %v2121_v42  ;;  %v890_v10 = vpop.f32.mrb[23].mxu1 }
 0x3bb   : > { %v891_v14 = vadd.f32 %v2121_v42, %v890_v10  ;;  %2520 = vmatprep.mubr.msk.f32.mxu0 %vm228_vm0, %v943_v58 }
 0x3bc   : > { %2521 = vmatmul.mubr.msk.f32.gmra.mrb[36].mxu0 %vm228_vm0, %v944_v12  ;;  %v946_v17 = vmax.f32 %v896_v13, 0.0 }
 0x3bd   : > { %v945_v15 = vmax.f32 %v891_v14, 0.0  ;;  %v2496_v16 = vpop.f32.mrb[24].mxu1 }
 0x3be   : > { %v906_v18 = vadd.f32 %v2496_v16, %v2121_v42  ;;  %v900_v19 = vpop.f32.mrb[25].mxu1 }
 0x3bf   : > { %v901_v20 = vadd.f32 %v2121_v42, %v900_v19  ;;  %2523 = vmatprep.mubr.msk.f32.mxu0 %vm228_vm0, %v945_v15 }
 0x3c0   : > { %2524 = vmatmul.mubr.msk.f32.gmra.mrb[38].mxu0 %vm228_vm0, %v946_v17  ;;  %v948_v24 = vmax.f32 %v906_v18, 0.0 }
 0x3c1   : > { %v947_v21 = vmax.f32 %v901_v20, 0.0  ;;  %v2499_v23 = vpop.f32.mrb[26].mxu1 }
 0x3c2   : > { %v916_v25 = vadd.f32 %v2499_v23, %v2121_v42  ;;  %v910_v26 = vpop.f32.mrb[27].mxu1 }
 0x3c3   : > { %v911_v27 = vadd.f32 %v2121_v42, %v910_v26  ;;  %2526 = vmatprep.mubr.msk.f32.mxu0 %vm228_vm0, %v947_v21 }
 0x3c4   : > { %2527 = vmatmul.mubr.msk.f32.gmra.mrb[40].mxu0 %vm228_vm0, %v948_v24  ;;  %v950_v30 = vmax.f32 %v916_v25, 0.0 }
 0x3c5   : > { %v949_v28 = vmax.f32 %v911_v27, 0.0  ;;  %v2502_v29 = vpop.f32.mrb[28].mxu1 }
 0x3c6   : > { %v926_v31 = vadd.f32 %v2502_v29, %v2121_v42  ;;  %v920_v32 = vpop.f32.mrb[29].mxu1 }
 0x3c7   : > { %v921_v33 = vadd.f32 %v2121_v42, %v920_v32  ;;  %2529 = vmatprep.mubr.msk.f32.mxu0 %vm228_vm0, %v949_v28 }
 0x3c8   : > { %2530 = vmatmul.mubr.msk.f32.gmra.mrb[42].mxu0 %vm228_vm0, %v950_v30  ;;  %v952_v36 = vmax.f32 %v926_v31, 0.0 }
 0x3c9   : > { %v951_v34 = vmax.f32 %v921_v33, 0.0  ;;  %v2505_v35 = vpop.f32.mrb[30].mxu1 }
 0x3ca   : > { %v936_v37 = vadd.f32 %v2505_v35, %v2121_v42  ;;  %v930_v38 = vpop.f32.mrb[31].mxu1 }
 0x3cb   : > { %v931_v39 = vadd.f32 %v2121_v42, %v930_v38  ;;  %2532 = vmatprep.mubr.msk.f32.mxu0 %vm228_vm0, %v951_v34 }
 0x3cc   : > { %2533 = vmatmul.mubr.msk.f32.gmra.mrb[44].mxu0 %vm228_vm0, %v952_v36  ;;  %v954_v41 = vmax.f32 %v936_v37, 0.0 }
 0x3cd   : > { %v953_v40 = vmax.f32 %v931_v39, 0.0 }
 0x3cf   : > { %2535 = vmatprep.mubr.msk.f32.mxu0 %vm228_vm0, %v953_v40 }
 0x3d0   : > { %2536 = vmatmul.mubr.msk.f32.gmra.mrb[46].mxu0 %vm228_vm0, %v954_v41 }
 0x487   : > { %v2516_v43 = vpop.f32.mrb[32].mxu0 }
 0x488   : > { %v1074_v44 = vpop.f32.mrb[33].mxu0 }
 0x489   : > { %v2723_v45 = vpack.c.bf16 %v2516_v43, %v1074_v44 }
 0x48b   : > { %v2519_v46 = vpop.f32.mrb[34].mxu0  ;;  %2724 = vmatprep.subr.bf16.mxu1 %v2723_v45 }
 0x48c   : > { %v1084_v47 = vpop.f32.mrb[35].mxu0  ;;  %2726 = vmatpush3.bf16.msra.mxu1 %v2723_v45 }
 0x48d   : > { %v2727_v48 = vpack.c.bf16 %v2519_v46, %v1084_v47 }
 0x48f   : > { %v2522_v49 = vpop.f32.mrb[36].mxu0  ;;  %2728 = vmatprep.subr.bf16.mxu1 %v2727_v48 }
 0x490   : > { %v1094_v42 = vpop.f32.mrb[37].mxu0  ;;  %2730 = vmatpush3.bf16.msra.mxu1 %v2727_v48 }
 0x491   : > { %v2731_v50 = vpack.c.bf16 %v2522_v49, %v1094_v42 }
 0x493   : > { %v2525_v51 = vpop.f32.mrb[38].mxu0  ;;  %2732 = vmatprep.subr.bf16.mxu1 %v2731_v50 }
 0x494   : > { %v1104_v52 = vpop.f32.mrb[39].mxu0  ;;  %2734 = vmatpush3.bf16.msra.mxu1 %v2731_v50 }
 0x495   : > { %v2735_v53 = vpack.c.bf16 %v2525_v51, %v1104_v52 }
 0x497   : > { %v2528_v22 = vpop.f32.mrb[40].mxu0  ;;  %2736 = vmatprep.subr.bf16.mxu1 %v2735_v53 }
 0x498   : > { %v1114_v54 = vpop.f32.mrb[41].mxu0  ;;  %2738 = vmatpush3.bf16.msra.mxu1 %v2735_v53 }
 0x499   : > { %v2739_v55 = vpack.c.bf16 %v2528_v22, %v1114_v54 }
 0x49b   : > { %v2531_v56 = vpop.f32.mrb[42].mxu0  ;;  %2740 = vmatprep.subr.bf16.mxu1 %v2739_v55 }
 0x49c   : > { %v1124_v57 = vpop.f32.mrb[43].mxu0  ;;  %2742 = vmatpush3.bf16.msra.mxu1 %v2739_v55 }
 0x49d   : > { %v2743_v58 = vpack.c.bf16 %v2531_v56, %v1124_v57 }
 0x49f   : > { %v2534_v11 = vpop.f32.mrb[44].mxu0  ;;  %2744 = vmatprep.subr.bf16.mxu1 %v2743_v58 }
 0x4a0   : > { %v1134_v12 = vpop.f32.mrb[45].mxu0  ;;  %2746 = vmatpush3.bf16.msra.mxu1 %v2743_v58 }
 0x4a1   : > { %v2747_v13 = vpack.c.bf16 %v2534_v11, %v1134_v12 }
 0x4a3   : > { %v2537_v10 = vpop.f32.mrb[46].mxu0  ;;  %2748 = vmatprep.subr.bf16.mxu1 %v2747_v13 }
 0x4a4   : > { %v1144_v14 = vpop.f32.mrb[47].mxu0  ;;  %2750 = vmatpush3.bf16.msra.mxu1 %v2747_v13 }
 0x4a5   : > { %v2751_v15 = vpack.c.bf16 %v2537_v10, %v1144_v14 }
 0x4a7   : > { %2752 = vmatprep.subr.bf16.mxu1 %v2751_v15 }
 0x4a8   : > { %2754 = vmatpush3.bf16.msra.mxu1 %v2751_v15 }
 0x4ab   : > { %2571 = vmatmul.mubr.f32.vlgmr.msra.gmra.mrb[32].mxu1 %v2986_v59  ;;  %v2863_v59 = vmov 0.0|0.0  }
 0x4ac   : > { %2573 = vmatprep.mubr.f32.mxu1 %v2989_v60  ;;  %2755 = vmatprep.subr.bf16.mxu0 %v2863_v59  ;;  %v1399_v60 = vld [vmem:[%s3359_s2 + $0x83] sm:$0xff] }
 0x4af   : > { %2574 = vmatmul.mubr.f32.gmra.mrb[34].mxu1 %v2994_v61  ;;  %v1400_v61 = vld [vmem:[%s3359_s2 + $0x8b] sm:$0xff] }
 0x4b0   : > { %2576 = vmatprep.mubr.f32.mxu1 %v2997_v62  ;;  %v2756_v62 = vpack.c.bf16 %v1400_v61, %v1399_v60 }
 0x4b2   : > { %2757 = vmatpush3.bf16.msra.mxu0 %v2756_v62 }
 0x4b3   : > { %2577 = vmatmul.mubr.f32.gmra.mrb[36].mxu1 %v3002_v63  ;;  %2758 = vmatprep.subr.bf16.mxu0 %v2863_v59  ;;  %v1401_v63 = vld [vmem:[%s3359_s2 + $0x93] sm:$0xff] }
 0x4b4   : > { %2579 = vmatprep.mubr.f32.mxu1 %v3005_v0  ;;  %v1402_v0 = vld [vmem:[%s3359_s2 + $0x9b] sm:$0xff] }
 0x4b7   : > { %2580 = vmatmul.mubr.f32.gmra.mrb[38].mxu1 %v3010_v1  ;;  %v2759_v1 = vpack.c.bf16 %v1402_v0, %v1401_v63 }
 0x4b8   : > { %2582 = vmatprep.mubr.f32.mxu1 %v3013_v2  ;;  %v2865_v2 = vmov 0.0  }
 0x4b9   : > { %2602 = vmatprep.mubr.msk.f32.mxu0 %vm2864_vm2, %v2865_v2  ;;  %2760 = vmatpush3.bf16.msra.mxu0 %v2759_v1 }
 0x4ba   : > { %2761 = vmatprep.subr.bf16.mxu0 %v2863_v59 }
 0x4bb   : > { %2583 = vmatmul.mubr.f32.gmra.mrb[40].mxu1 %v3018_v3 }
 0x4bc   : > { %2585 = vmatprep.mubr.f32.mxu1 %v3021_v4  ;;  %v3147_v4 = vld [vmem:[%s3359_s2 + $0x82] ss:$0 sm:$0xff] }
 0x4bf   : > { %2586 = vmatmul.mubr.f32.gmra.mrb[42].mxu1 %v3026_v5 }
 0x4c0   : > { %2588 = vmatprep.mubr.f32.mxu1 %v3029_v6 }
 0x4c3   : > { %2589 = vmatmul.mubr.f32.gmra.mrb[44].mxu1 %v3034_v7 }
 0x4c4   : > { %2591 = vmatprep.mubr.f32.mxu1 %v3037_v8 }
 0x4c7   : > { %2592 = vmatmul.mubr.f32.gmra.mrb[46].mxu1 %v3042_v9 }
 0x57e   : > { %v2572_v3 = vpop.f32.mrb[32].mxu1 }
 0x57f   : > { %v1223_v5 = vpop.f32.mrb[33].mxu1  ;;  %v1229_v6 = vadd.f32 %v2572_v3, %v3147_v4 }
 0x580   : > { %v1224_v7 = vadd.f32 %v3147_v4, %v1223_v5 }
 0x581   : > { %v3155_v19 = vmax.f32 %v1229_v6, 0.0 }
 0x582   : > { %v2575_v8 = vpop.f32.mrb[34].mxu1  ;;  %v3157_v20 = vmax.f32 %v1224_v7, 0.0 }
 0x583   : > { %v1239_v9 = vadd.f32 %v2575_v8, %v3147_v4  ;;  %v1233_v16 = vpop.f32.mrb[35].mxu1  ;;  %v1319_v30 = vsel %vm228_vm0, %v3155_v19, 0.0 }
 0x584   : > { %v1234_v17 = vadd.f32 %v3147_v4, %v1233_v16  ;;  %v1318_v31 = vsel %vm228_vm0, %v3157_v20, 0.0 }
 0x585   : > { %v3153_v18 = vmax.f32 %v1239_v9, 0.0  ;;  %v1320_v40 = vadd.f32 %v1319_v30, %v1318_v31 }
 0x586   : > { %v3159_v21 = vmax.f32 %v1234_v17, 0.0  ;;  %v2578_v23 = vpop.f32.mrb[36].mxu1 }
 0x587   : > { %v1249_v24 = vadd.f32 %v2578_v23, %v3147_v4  ;;  %v1243_v25 = vpop.f32.mrb[37].mxu1  ;;  %v1328_v26 = vsel %vm228_vm0, %v3153_v18, 0.0  ;;  %v1321_v52 = vrot.slane %v1320_v40, 4 }
 0x588   : > { %v1327_v27 = vsel %vm228_vm0, %v3159_v21, 0.0  ;;  %v1244_v28 = vadd.f32 %v3147_v4, %v1243_v25 }
 0x589   : > { %v3167_v29 = vmax.f32 %v1249_v24, 0.0  ;;  %v1329_v34 = vadd.f32 %v1328_v26, %v1327_v27  ;;  %v1322_v15 = vadd.f32 %v1321_v52, %v1320_v40 }
 0x58a   : > { %v3173_v32 = vmax.f32 %v1244_v28, 0.0  ;;  %v2581_v33 = vpop.f32.mrb[38].mxu1 }
 0x58b   : > { %v1337_v35 = vsel %vm228_vm0, %v3167_v29, 0.0  ;;  %v1259_v36 = vadd.f32 %v2581_v33, %v3147_v4  ;;  %v1253_v37 = vpop.f32.mrb[39].mxu1  ;;  %v1330_v46 = vrot.slane %v1329_v34, 4  ;;  %v1323_v17 = vrot.slane %v1322_v15, 2 }
 0x58c   : > { %v1336_v38 = vsel %vm228_vm0, %v3173_v32, 0.0  ;;  %v1254_v39 = vadd.f32 %v3147_v4, %v1253_v37 }
 0x58d   : > { %v1338_v41 = vadd.f32 %v1337_v35, %v1336_v38  ;;  %v3181_v43 = vmax.f32 %v1259_v36, 0.0  ;;  %v1331_v56 = vadd.f32 %v1330_v46, %v1329_v34  ;;  %v1324_v40 = vadd.f32 %v1323_v17, %v1322_v15 }
 0x58e   : > { %v3183_v44 = vmax.f32 %v1254_v39, 0.0  ;;  %v2584_v45 = vpop.f32.mrb[40].mxu1 }
 0x58f   : > { %v1339_v47 = vrot.slane %v1338_v41, 4  ;;  %v1346_v48 = vsel %vm228_vm0, %v3181_v43, 0.0  ;;  %v1263_v49 = vpop.f32.mrb[41].mxu1  ;;  %v1269_v50 = vadd.f32 %v2584_v45, %v3147_v4  ;;  %v1332_v1 = vrot.slane %v1331_v56, 2 }
 0x590   : > { %v1345_v42 = vsel %vm228_vm0, %v3183_v44, 0.0  ;;  %v1264_v51 = vadd.f32 %v3147_v4, %v1263_v49 }
 0x591   : > { %v1347_v53 = vadd.f32 %v1346_v48, %v1345_v42  ;;  %v3191_v22 = vmax.f32 %v1269_v50, 0.0  ;;  %v1340_v57 = vadd.f32 %v1339_v47, %v1338_v41  ;;  %v1333_v30 = vadd.f32 %v1332_v1, %v1331_v56 }
 0x592   : > { %v3193_v54 = vmax.f32 %v1264_v51, 0.0  ;;  %v2587_v55 = vpop.f32.mrb[42].mxu1 }
 0x593   : > { %v1348_v58 = vrot.slane %v1347_v53, 4  ;;  %v1273_v11 = vpop.f32.mrb[43].mxu1  ;;  %v1355_v12 = vsel %vm228_vm0, %v3191_v22, 0.0  ;;  %v1279_v10 = vadd.f32 %v2587_v55, %v3147_v4  ;;  %v1341_v3 = vrot.slane %v1340_v57, 2 }
 0x594   : > { %v1354_v13 = vsel %vm228_vm0, %v3193_v54, 0.0  ;;  %v1274_v14 = vadd.f32 %v3147_v4, %v1273_v11  ;;  %v1334_v42 = vrot.slane %v1333_v30, 1 }
 0x595   : > { %v1349_v60 = vadd.f32 %v1348_v58, %v1347_v53  ;;  %v1356_v61 = vadd.f32 %v1355_v12, %v1354_v13  ;;  %v3201_v62 = vmax.f32 %v1279_v10, 0.0  ;;  %v1342_v31 = vadd.f32 %v1341_v3, %v1340_v57 }
 0x596   : > { %v3203_v63 = vmax.f32 %v1274_v14, 0.0  ;;  %v2590_v0 = vpop.f32.mrb[44].mxu1  ;;  %v1335_v13 = vadd.f32 %v1334_v42, %v1333_v30 }
 0x597   : > { %v1357_v5 = vrot.slane %v1356_v61, 4  ;;  %v1283_v6 = vpop.f32.mrb[45].mxu1  ;;  %v1364_v7 = vsel %vm228_vm0, %v3201_v62, 0.0  ;;  %v1289_v9 = vadd.f32 %v2590_v0, %v3147_v4  ;;  %v1350_v23 = vrot.slane %v1349_v60, 2 }
 0x598   : > { %v1363_v8 = vsel %vm228_vm0, %v3203_v63, 0.0  ;;  %v1284_v16 = vadd.f32 %v3147_v4, %v1283_v6  ;;  %v1343_v51 = vrot.slane %v1342_v31, 1  ;;  %v1392_v6 = vmul.f32 0.0625, %v1335_v13 }
 0x599   : > { %v1358_v24 = vadd.f32 %v1357_v5, %v1356_v61  ;;  %v1365_v25 = vadd.f32 %v1364_v7, %v1363_v8  ;;  %v3211_v26 = vmax.f32 %v1289_v9, 0.0  ;;  %v1351_v41 = vadd.f32 %v1350_v23, %v1349_v60 }
 0x59a   : > { %v3213_v27 = vmax.f32 %v1284_v16, 0.0  ;;  %v2593_v28 = vpop.f32.mrb[46].mxu1  ;;  %v1344_v15 = vadd.f32 %v1343_v51, %v1342_v31 }
 0x59b   : > { %v1359_v33 = vrot.slane %v1358_v24, 2  ;;  %v1299_v34 = vadd.f32 %v2593_v28, %v3147_v4  ;;  %v1293_v35 = vpop.f32.mrb[47].mxu1  ;;  %v1366_v36 = vrot.slane %v1365_v25, 4  ;;  %v1373_v37 = vsel %vm228_vm0, %v3211_v26, 0.0 }
 0x59c   : > { %v1372_v38 = vsel %vm228_vm0, %v3213_v27, 0.0  ;;  %v1294_v39 = vadd.f32 %v3147_v4, %v1293_v35  ;;  %v1325_v4 = vrot.slane %v1324_v40, 1  ;;  %v1352_v56 = vrot.slane %v1351_v41, 1 }
 0x59d   : > { %v1374_v45 = vadd.f32 %v1373_v37, %v1372_v38  ;;  %v1360_v46 = vadd.f32 %v1359_v33, %v1358_v24  ;;  %v1367_v47 = vadd.f32 %v1366_v36, %v1365_v25  ;;  %v3221_v48 = vmax.f32 %v1299_v34, 0.0 }
 0x59e   : > { %v3223_v49 = vmax.f32 %v1294_v39, 0.0  ;;  %v1326_v61 = vadd.f32 %v1325_v4, %v1324_v40  ;;  %v1353_v0 = vadd.f32 %v1352_v56, %v1351_v41  ;;  %v1393_v16 = vmul.f32 0.0625, %v1344_v15 }
 0x59f   : > { %v1375_v50 = vrot.slane %v1374_v45, 4  ;;  %v1368_v52 = vrot.slane %v1367_v47, 2  ;;  %v1382_v53 = vsel %vm228_vm0, %v3221_v48, 0.0  ;;  %v1361_v11 = vrot.slane %v1360_v46, 1 }
 0x5a0   : > { %v1381_v55 = vsel %vm228_vm0, %v3223_v49, 0.0  ;;  %v1391_v17 = vmul.f32 0.0625, %v1326_v61  ;;  %v1394_v23 = vmul.f32 0.0625, %v1353_v0 }
 0x5a1   : > { %v1376_v57 = vadd.f32 %v1375_v50, %v1374_v45  ;;  %v1383_v58 = vadd.f32 %v1382_v53, %v1381_v55  ;;  %v1369_v12 = vadd.f32 %v1368_v52, %v1367_v47  ;;  %v1362_v5 = vadd.f32 %v1361_v11, %v1360_v46 }
 0x5a2   : > { %v1412_v30 = vsel %vm1411_vm3, %v1392_v6, %v1391_v17  ;;  %v2866_v47 = vmov 1966171168   ;;  %v1503_v50 = vlaneseq }
 0x5a3   : > { %v1377_v10 = vrot.slane %v1376_v57, 2  ;;  %v1384_v14 = vrot.slane %v1383_v58, 4  ;;  %v1370_v60 = vrot.slane %v1369_v12, 1  ;;  %v1395_v28 = vmul.f32 0.0625, %v1362_v5 }
 0x5a4   : > { %v1414_v34 = vsel %vm1413_vm4, %v1393_v16, %v1412_v30  ;;  %v1501_v42 = vunpack.c.l.s4 %v2866_v47  ;;  %v1504_v53 = vshrl.u32 %v1503_v50, 7 }
 0x5a5   : > { %v1378_v1 = vadd.f32 %v1377_v10, %v1376_v57  ;;  %v1385_v3 = vadd.f32 %v1384_v14, %v1383_v58  ;;  %v1371_v7 = vadd.f32 %v1370_v60, %v1369_v12  ;;  %v1416_v37 = vsel %vm1415_vm5, %v1394_v23, %v1414_v34 }
 0x5a6   : > { %v1418_v38 = vsel %vm1417_vm6, %v1395_v28, %v1416_v37  ;;  %v1502_v52 = vunpack.c.0.s8 %v1501_v42  ;;  %v1550_v57 = vsub.s32 0, %v1504_v53 }
 0x5a7   : > { %v1379_v8 = vrot.slane %v1378_v1, 1  ;;  %v1386_v9 = vrot.slane %v1385_v3, 2  ;;  %v1396_v31 = vmul.f32 0.0625, %v1371_v7 }
 0x5a8   : > { %v1505_v55 = vsub.s32 %v1502_v52, %v1504_v53 }
 0x5a9   : > { %v1380_v24 = vadd.f32 %v1379_v8, %v1378_v1  ;;  %v1387_v25 = vadd.f32 %v1386_v9, %v1385_v3  ;;  %v1420_v40 = vsel %vm1419_vm7, %v1396_v31, %v1418_v38 }
 0x5ab   : > { %v1388_v33 = vrot.slane %v1387_v25, 1  ;;  %v1397_v35 = vmul.f32 0.0625, %v1380_v24 }
 0x5ad   : > { %v1389_v36 = vadd.f32 %v1388_v33, %v1387_v25  ;;  %v1422_v41 = vsel %vm1421_vm8, %v1397_v35, %v1420_v40 }
 0x5af   : > { %v1398_v39 = vmul.f32 0.0625, %v1389_v36 }
 0x5b1   : > { %v1424_v45 = vsel %vm1423_vm9, %v1398_v39, %v1422_v41 }
 0x5b2   : > { %2603 = vmatmul.mubr.msk.f32.vlgmr.msra.gmra.mrb[48].mxu0 %vm228_vm0, %v1424_v45 }
 0x5b3   : > { %2613 = vmatprep.mubr.msk.f32.mxu0 %vm2864_vm2, %v2865_v2 }
 0x685   : > { %v1493_v46 = vpop.f32.mrb[48].mxu0 }
 0x686   : > { %2785 = vtanh.f32 %v1493_v46  ;;  %v2604_v51 = vpop.f32.mrb[49].mxu0 }
 0x690   : > { %v2786_v4 = vpop.eup %2785 }
 0x691   : > { %v1506_v56 = vrot.slane %v2786_v4, %v1505_v55  ;;  %v1499_v58 = vcombine.high %v2786_v4, %v2786_v4 }
 0x693   : > { %v1522_v11 = vrot.slane %v1506_v56, %v1505_v55  ;;  %v1514_v12 = vcombine.high %v1506_v56, %v1506_v56  ;;  %v1513_v13 = vrot.slane %v1499_v58, %v1505_v55 }
 0x695   : > { %v1551_v10 = vrot.slane %v1522_v11, %v1550_v57  ;;  %v1536_v14 = vrot.slane %v1514_v12, %v1505_v55  ;;  %v1544_v15 = vcombine.high %v1522_v11, %v1522_v11  ;;  %v1529_v0 = vrot.slane %v1513_v13, %v1505_v55 }
 0x696   : > { %v1515_v9 = vcombine.high %v1513_v13, %v1513_v13 }
 0x697   : > { %v1588_v60 = vmul.f32 %v1551_v10, %v3157_v20  ;;  %v1555_v61 = vrot.slane %v1536_v14, %v1550_v57  ;;  %v1589_v5 = vmul.f32 %v1551_v10, %v3155_v19  ;;  %v1559_v6 = vrot.slane %v1544_v15, %v1550_v57  ;;  %v1820_v15 = vld [vmem:[%s3359_s2 + $0xa3] sm:$0xff] }
 0x698   : > { %v1567_v23 = vrot.slane %v1529_v0, %v1550_v57  ;;  %v1546_v24 = vcombine.high %v1536_v14, %v1536_v14  ;;  %v1543_v34 = vrot.slane %v1515_v9, %v1505_v55  ;;  %v1545_v40 = vcombine.high %v1529_v0, %v1529_v0 }
 0x699   : > { %v1604_v1 = vsel %vm228_vm0, %v1588_v60, 0.0  ;;  %v1590_v3 = vmul.f32 %v1555_v61, %v3159_v21  ;;  %v1591_v8 = vmul.f32 %v1555_v61, %v3153_v18  ;;  %v1607_v16 = vsel %vm228_vm0, %v1589_v5, 0.0  ;;  %v1821_v60 = vld [vmem:[%s3359_s2 + $0xab] sm:$0xff]  ;;  %v1822_v61 = vld [vmem:[%s3359_s2 + $0xb3] sm:$0xff] }
 0x69a   : > { %1605 = vadd.xlane.f32.xlu0 %v1604_v1  ;;  %v1592_v17 = vmul.f32 %v1559_v6, %v3173_v32  ;;  %v1593_v28 = vmul.f32 %v1559_v6, %v3167_v29  ;;  %v1596_v31 = vmul.f32 %v1567_v23, %v3193_v54  ;;  %v1563_v33 = vrot.slane %v1546_v24, %v1550_v57  ;;  %v1823_v1 = vld [vmem:[%s3359_s2 + $0xbb] sm:$0xff] }
 0x69b   : > { %v1610_v7 = vsel %vm228_vm0, %v1590_v3, 0.0  ;;  %v1613_v25 = vsel %vm228_vm0, %v1591_v8, 0.0  ;;  %v1597_v36 = vmul.f32 %v1567_v23, %v3191_v22  ;;  %v1571_v39 = vrot.slane %v1543_v34, %v1550_v57 }
 0x69c   : > { %1611 = vadd.xlane.f32.xlu1 %v1610_v7  ;;  %v1616_v30 = vsel %vm228_vm0, %v1592_v17, 0.0  ;;  %v1619_v35 = vsel %vm228_vm0, %v1593_v28, 0.0  ;;  %v1628_v37 = vsel %vm228_vm0, %v1596_v31, 0.0  ;;  %v1594_v38 = vmul.f32 %v1563_v33, %v3183_v44 }
 0x69d   : > { %v1631_v41 = vsel %vm228_vm0, %v1597_v36, 0.0  ;;  %v1595_v45 = vmul.f32 %v1563_v33, %v3181_v43  ;;  %v1598_v47 = vmul.f32 %v1571_v39, %v3203_v63  ;;  %v1575_v42 = vrot.slane %v1545_v40, %v1550_v57 }
 0x69e   : > { %1608 = vadd.xlane.f32.xlu0 %v1607_v16  ;;  %v1622_v46 = vsel %vm228_vm0, %v1594_v38, 0.0  ;;  %v1547_v50 = vcombine.high %v1543_v34, %v1543_v34  ;;  %v1599_v52 = vmul.f32 %v1571_v39, %v3201_v62  ;;  %v2762_v0 = vpack.c.bf16 %v1821_v60, %v1820_v15 }
 0x69f   : > { %v1625_v51 = vsel %vm228_vm0, %v1595_v45, 0.0  ;;  %v1634_v53 = vsel %vm228_vm0, %v1598_v47, 0.0  ;;  %v1600_v55 = vmul.f32 %v1575_v42, %v3213_v27  ;;  %v1601_v58 = vmul.f32 %v1575_v42, %v3211_v26 }
 0x6a0   : > { %1614 = vadd.xlane.f32.xlu1 %v1613_v25  ;;  %v1579_v4 = vrot.slane %v1547_v50, %v1550_v57  ;;  %v1637_v56 = vsel %vm228_vm0, %v1599_v52, 0.0  ;;  %2763 = vmatpush3.bf16.msra.mxu0 %v2762_v0  ;;  %v2765_v3 = vpack.c.bf16 %v1823_v1, %v1822_v61 }
 0x6a1   : > { %v1640_v11 = vsel %vm228_vm0, %v1600_v55, 0.0  ;;  %v1643_v13 = vsel %vm228_vm0, %v1601_v58, 0.0  ;;  %2764 = vmatprep.subr.bf16.mxu0 %v2863_v59 }
 0x6a2   : > { %1617 = vadd.xlane.f32.xlu0 %v1616_v30  ;;  %v1602_v12 = vmul.f32 %v1579_v4, %v3223_v49  ;;  %v1603_v10 = vmul.f32 %v1579_v4, %v3221_v48 }
 0x6a4   : > { %1620 = vadd.xlane.f32.xlu1 %v1619_v35  ;;  %v1646_v14 = vsel %vm228_vm0, %v1602_v12, 0.0  ;;  %v1649_v57 = vsel %vm228_vm0, %v1603_v10, 0.0  ;;  %2766 = vmatpush3.bf16.msra.mxu0 %v2765_v3 }
 0x6a5   : > { %2767 = vmatprep.subr.bf16.mxu0 %v2863_v59 }
 0x6a6   : > { %1629 = vadd.xlane.f32.xlu0 %v1628_v37 }
 0x6a8   : > { %1632 = vadd.xlane.f32.xlu1 %v1631_v41 }
 0x6aa   : > { %1623 = vadd.xlane.f32.xlu0 %v1622_v46 }
 0x6ac   : > { %1626 = vadd.xlane.f32.xlu1 %v1625_v51 }
 0x6ae   : > { %1635 = vadd.xlane.f32.xlu0 %v1634_v53 }
 0x6b0   : > { %1638 = vadd.xlane.f32.xlu1 %v1637_v56 }
 0x6b2   : > { %1641 = vadd.xlane.f32.xlu0 %v1640_v11 }
 0x6b4   : > { %1644 = vadd.xlane.f32.xlu1 %v1643_v13 }
 0x6b6   : > { %1647 = vadd.xlane.f32.xlu0 %v1646_v14 }
 0x6b8   : > { %1650 = vadd.xlane.f32.xlu1 %v1649_v57 }
 0x727   : > { %v1606_v5 = vpop.xlane.xlu0 %1605 }
 0x728   : > { %v1652_v6 = vsub.f32 0.0, %v1606_v5 }
 0x729   : > { %v1612_v7 = vpop.xlane.xlu1 %1611 }
 0x72a   : > { %v1668_v8 = vmul.f32 1.442695, %v1652_v6  ;;  %v1654_v9 = vsub.f32 0.0, %v1612_v7 }
 0x72b   : > { %v1609_v16 = vpop.xlane.xlu0 %1608 }
 0x72c   : > { %2787 = vpow2.f32 %v1668_v8  ;;  %v1672_v17 = vmul.f32 1.442695, %v1654_v9  ;;  %v1653_v23 = vsub.f32 0.0, %v1609_v16 }
 0x72d   : > { %v1615_v24 = vpop.xlane.xlu1 %1614 }
 0x72e   : > { %2789 = vpow2.f32 %v1672_v17  ;;  %v1670_v25 = vmul.f32 1.442695, %v1653_v23  ;;  %v1655_v28 = vsub.f32 0.0, %v1615_v24 }
 0x72f   : > { %v1618_v30 = vpop.xlane.xlu0 %1617 }
 0x730   : > { %2791 = vpow2.f32 %v1670_v25  ;;  %v1674_v31 = vmul.f32 1.442695, %v1655_v28  ;;  %v1656_v33 = vsub.f32 0.0, %v1618_v30 }
 0x731   : > { %v1621_v34 = vpop.xlane.xlu1 %1620 }
 0x732   : > { %2793 = vpow2.f32 %v1674_v31  ;;  %v1676_v35 = vmul.f32 1.442695, %v1656_v33  ;;  %v1657_v36 = vsub.f32 0.0, %v1621_v34 }
 0x733   : > { %v1630_v37 = vpop.xlane.xlu0 %1629 }
 0x734   : > { %2795 = vpow2.f32 %v1676_v35  ;;  %v1678_v38 = vmul.f32 1.442695, %v1657_v36  ;;  %v1660_v39 = vsub.f32 0.0, %v1630_v37 }
 0x735   : > { %v1633_v40 = vpop.xlane.xlu1 %1632 }
 0x736   : > { %v2788_v41 = vpop.eup %2787  ;;  %2797 = vpow2.f32 %v1678_v38  ;;  %v1684_v45 = vmul.f32 1.442695, %v1660_v39  ;;  %v1661_v46 = vsub.f32 0.0, %v1633_v40 }
 0x737   : > { %v1700_v47 = vadd.f32 1.0, %v2788_v41  ;;  %v1624_v42 = vpop.xlane.xlu0 %1623 }
 0x738   : > { %v2790_v50 = vpop.eup %2789  ;;  %2799 = vpow2.f32 %v1684_v45  ;;  %v1686_v51 = vmul.f32 1.442695, %v1661_v46  ;;  %v1658_v52 = vsub.f32 0.0, %v1624_v42 }
 0x739   : > { %2801 = vrcp.f32 %v1700_v47  ;;  %v1702_v53 = vadd.f32 1.0, %v2790_v50  ;;  %v1627_v55 = vpop.xlane.xlu1 %1626 }
 0x73a   : > { %v2792_v4 = vpop.eup %2791  ;;  %2803 = vpow2.f32 %v1686_v51  ;;  %v1680_v56 = vmul.f32 1.442695, %v1658_v52  ;;  %v1659_v58 = vsub.f32 0.0, %v1627_v55 }
 0x73b   : > { %2805 = vrcp.f32 %v1702_v53  ;;  %v1701_v11 = vadd.f32 1.0, %v2792_v4  ;;  %v1636_v12 = vpop.xlane.xlu0 %1635 }
 0x73c   : > { %v2794_v13 = vpop.eup %2793  ;;  %2807 = vpow2.f32 %v1680_v56  ;;  %v1682_v10 = vmul.f32 1.442695, %v1659_v58  ;;  %v1662_v14 = vsub.f32 0.0, %v1636_v12 }
 0x73d   : > { %2809 = vrcp.f32 %v1701_v11  ;;  %v1703_v57 = vadd.f32 1.0, %v2794_v13  ;;  %v1639_v15 = vpop.xlane.xlu1 %1638 }
 0x73e   : > { %v2796_v60 = vpop.eup %2795  ;;  %2811 = vpow2.f32 %v1682_v10  ;;  %v1688_v61 = vmul.f32 1.442695, %v1662_v14  ;;  %v1663_v0 = vsub.f32 0.0, %v1639_v15 }
 0x73f   : > { %2813 = vrcp.f32 %v1703_v57  ;;  %v1704_v1 = vadd.f32 1.0, %v2796_v60  ;;  %v1642_v3 = vpop.xlane.xlu0 %1641 }
 0x740   : > { %v2798_v5 = vpop.eup %2797  ;;  %2815 = vpow2.f32 %v1688_v61  ;;  %v1690_v6 = vmul.f32 1.442695, %v1663_v0  ;;  %v1664_v7 = vsub.f32 0.0, %v1642_v3 }
 0x741   : > { %2817 = vrcp.f32 %v1704_v1  ;;  %v1705_v8 = vadd.f32 1.0, %v2798_v5  ;;  %v1645_v9 = vpop.xlane.xlu1 %1644 }
 0x742   : > { %v2800_v16 = vpop.eup %2799  ;;  %2819 = vpow2.f32 %v1690_v6  ;;  %v1692_v17 = vmul.f32 1.442695, %v1664_v7  ;;  %v1665_v23 = vsub.f32 0.0, %v1645_v9 }
 0x743   : > { %v2802_v24 = vpop.eup %2801  ;;  %2821 = vrcp.f32 %v1705_v8  ;;  %v1708_v25 = vadd.f32 1.0, %v2800_v16  ;;  %v1648_v28 = vpop.xlane.xlu0 %1647 }
 0x744   : > { %v2804_v30 = vpop.eup %2803  ;;  %2823 = vpow2.f32 %v1692_v17  ;;  %v1694_v31 = vmul.f32 1.442695, %v1665_v23  ;;  %v1666_v33 = vsub.f32 0.0, %v1648_v28  ;;  %v1732_v10 = vmul.f32 %v2802_v24, %v3157_v20 }
 0x745   : > { %v2806_v34 = vpop.eup %2805  ;;  %2825 = vrcp.f32 %v1708_v25  ;;  %v1709_v35 = vadd.f32 1.0, %v2804_v30  ;;  %v1651_v36 = vpop.xlane.xlu1 %1650 }
 0x746   : > { %v2808_v37 = vpop.eup %2807  ;;  %2827 = vpow2.f32 %v1694_v31  ;;  %v1696_v38 = vmul.f32 1.442695, %v1666_v33  ;;  %v1667_v41 = vsub.f32 0.0, %v1651_v36  ;;  %v1734_v4 = vmul.f32 %v2806_v34, %v3159_v21 }
 0x747   : > { %v2810_v39 = vpop.eup %2809  ;;  %2829 = vrcp.f32 %v1709_v35  ;;  %v1706_v40 = vadd.f32 1.0, %v2808_v37  ;;  %v1748_v3 = vsel %vm228_vm0, %v1732_v10, 0.0 }
 0x748   : > { %v2812_v45 = vpop.eup %2811  ;;  %2831 = vpow2.f32 %v1696_v38  ;;  %v1698_v42 = vmul.f32 1.442695, %v1667_v41  ;;  %v1733_v56 = vmul.f32 %v2810_v39, %v3155_v19  ;;  %v1757_v21 = vsel %vm228_vm0, %v1734_v4, 0.0 }
 0x749   : > { %v2814_v46 = vpop.eup %2813  ;;  %2833 = vrcp.f32 %v1706_v40  ;;  %v1707_v47 = vadd.f32 1.0, %v2812_v45 }
 0x74a   : > { %v2816_v50 = vpop.eup %2815  ;;  %v1735_v51 = vmul.f32 %v2814_v46, %v3153_v18  ;;  %v1749_v19 = vsel %vm228_vm0, %v1733_v56, 0.0 }
 0x74b   : > { %v2818_v52 = vpop.eup %2817  ;;  %2835 = vrcp.f32 %v1707_v47  ;;  %v1710_v53 = vadd.f32 1.0, %v2816_v50  ;;  %v1750_v8 = vadd.f32 %v1749_v19, %v1748_v3 }
 0x74c   : > { %v2820_v55 = vpop.eup %2819  ;;  %2837 = vpow2.f32 %v1698_v42  ;;  %v1736_v11 = vmul.f32 %v2818_v52, %v3173_v32  ;;  %v1758_v14 = vsel %vm228_vm0, %v1735_v51, 0.0 }
 0x74d   : > { %v2822_v58 = vpop.eup %2821  ;;  %2839 = vrcp.f32 %v1710_v53  ;;  %v1711_v12 = vadd.f32 1.0, %v2820_v55  ;;  %v1759_v0 = vadd.f32 %v1758_v14, %v1757_v21 }
 0x74e   : > { %v2824_v13 = vpop.eup %2823  ;;  %v1737_v18 = vmul.f32 %v2822_v58, %v3167_v29  ;;  %v1766_v1 = vsel %vm228_vm0, %v1736_v11, 0.0 }
 0x74f   : > { %v2826_v57 = vpop.eup %2825  ;;  %2841 = vrcp.f32 %v1711_v12  ;;  %v1712_v15 = vadd.f32 1.0, %v2824_v13  ;;  %v1760_v24 = vrot.slane %v1759_v0, 4 }
 0x750   : > { %v2828_v60 = vpop.eup %2827  ;;  %v1767_v61 = vsel %vm228_vm0, %v1737_v18, 0.0  ;;  %v1740_v9 = vmul.f32 %v2826_v57, %v3193_v54 }
 0x751   : > { %v2830_v32 = vpop.eup %2829  ;;  %2843 = vrcp.f32 %v1712_v15  ;;  %v1768_v5 = vadd.f32 %v1767_v61, %v1766_v1  ;;  %v1713_v6 = vadd.f32 1.0, %v2828_v60  ;;  %v1761_v39 = vadd.f32 %v1760_v24, %v1759_v0 }
 0x752   : > { %v2832_v20 = vpop.eup %2831  ;;  %v1741_v29 = vmul.f32 %v2830_v32, %v3191_v22  ;;  %v1751_v22 = vrot.slane %v1750_v8, 4  ;;  %v1784_v34 = vsel %vm228_vm0, %v1740_v9, 0.0 }
 0x753   : > { %v2834_v7 = vpop.eup %2833  ;;  %v1714_v16 = vadd.f32 1.0, %v2832_v20  ;;  %2845 = vrcp.f32 %v1713_v6  ;;  %v1769_v30 = vrot.slane %v1768_v5, 4  ;;  %v1762_v52 = vrot.slane %v1761_v39, 2 }
 0x754   : > { %v1738_v17 = vmul.f32 %v2834_v7, %v3183_v44  ;;  %v1785_v25 = vsel %vm228_vm0, %v1741_v29, 0.0  ;;  %v1752_v46 = vadd.f32 %v1751_v22, %v1750_v8 }
 0x755   : > { %v2836_v23 = vpop.eup %2835  ;;  %2847 = vrcp.f32 %v1714_v16  ;;  %v1786_v36 = vadd.f32 %v1785_v25, %v1784_v34  ;;  %v1770_v41 = vadd.f32 %v1769_v30, %v1768_v5  ;;  %v1763_v14 = vadd.f32 %v1762_v52, %v1761_v39 }
 0x756   : > { %v2838_v28 = vpop.eup %2837  ;;  %v1739_v31 = vmul.f32 %v2836_v23, %v3181_v43  ;;  %v1775_v54 = vsel %vm228_vm0, %v1738_v17, 0.0  ;;  %v1753_v58 = vrot.slane %v1752_v46, 2 }
 0x757   : > { %v2840_v33 = vpop.eup %2839  ;;  %v1715_v35 = vadd.f32 1.0, %v2838_v28  ;;  %v1787_v42 = vrot.slane %v1786_v36, 4  ;;  %v1771_v56 = vrot.slane %v1770_v41, 2  ;;  %v1764_v3 = vrot.slane %v1763_v14, 1 }
 0x758   : > { %v1776_v44 = vsel %vm228_vm0, %v1739_v31, 0.0  ;;  %v1742_v37 = vmul.f32 %v2840_v33, %v3203_v63  ;;  %v1754_v61 = vadd.f32 %v1753_v58, %v1752_v46 }
 0x759   : > { %v2842_v38 = vpop.eup %2841  ;;  %v1777_v40 = vadd.f32 %v1776_v44, %v1775_v54  ;;  %2849 = vrcp.f32 %v1715_v35  ;;  %v1788_v10 = vadd.f32 %v1787_v42, %v1786_v36  ;;  %v1772_v15 = vadd.f32 %v1771_v56, %v1770_v41  ;;  %v2140_v56 = vld [vmem:[%s3359_s2 + $0xc3] ss:$0 sm:$0xff] }
 0x75a   : > { %v1743_v43 = vmul.f32 %v2842_v38, %v3201_v62  ;;  %v1793_v50 = vsel %vm228_vm0, %v1742_v37, 0.0  ;;  %v1755_v8 = vrot.slane %v1754_v61, 1  ;;  %v1765_v24 = vadd.f32 %v1764_v3, %v1763_v14 }
 0x75b   : > { %v2844_v45 = vpop.eup %2843  ;;  %v1778_v47 = vrot.slane %v1777_v40, 4  ;;  %v1789_v1 = vrot.slane %v1788_v10, 2  ;;  %v1773_v5 = vrot.slane %v1772_v15, 1 }
 0x75c   : > { %v1794_v51 = vsel %vm228_vm0, %v1743_v43, 0.0  ;;  %v1744_v63 = vmul.f32 %v2844_v45, %v3213_v27  ;;  %v1756_v30 = vadd.f32 %v1755_v8, %v1754_v61  ;;  %v1917_v43 = vld [vmem:[%s3359_s2 + $0xc4] sm:$0xff]  ;;  %v1918_v45 = vld [vmem:[%s3359_s2 + $0xcc] sm:$0xff] }
 0x75d   : > { %v1779_v53 = vadd.f32 %v1778_v47, %v1777_v40  ;;  %v1795_v55 = vadd.f32 %v1794_v51, %v1793_v50  ;;  %v2846_v4 = vpop.eup %2845  ;;  %v1790_v17 = vadd.f32 %v1789_v1, %v1788_v10  ;;  %v1774_v28 = vadd.f32 %v1773_v5, %v1772_v15 }
 0x75e   : > { %v1745_v12 = vmul.f32 %v2846_v4, %v3211_v26  ;;  %v1802_v18 = vsel %vm228_vm0, %v1744_v63, 0.0  ;;  %v1837_v54 = vsel %vm1411_vm3, %v1765_v24, %v1756_v30  ;;  %v2768_v51 = vpack.c.bf16 %v1918_v45, %v1917_v43  ;;  %v1920_v63 = vld [vmem:[%s3359_s2 + $0xdc] sm:$0xff] }
 0x75f   : > { %v1780_v11 = vrot.slane %v1779_v53, 2  ;;  %v1796_v62 = vrot.slane %v1795_v55, 4  ;;  %v2848_v13 = vpop.eup %2847  ;;  %v1791_v34 = vrot.slane %v1790_v17, 1  ;;  %v1838_v44 = vsel %vm1413_vm4, %v1774_v28, %v1837_v54 }
 0x760   : > { %v1803_v57 = vsel %vm228_vm0, %v1745_v12, 0.0  ;;  %v1746_v60 = vmul.f32 %v2848_v13, %v3223_v49 }
 0x761   : > { %v1797_v21 = vadd.f32 %v1796_v62, %v1795_v55  ;;  %v1804_v19 = vadd.f32 %v1803_v57, %v1802_v18  ;;  %v1781_v32 = vadd.f32 %v1780_v11, %v1779_v53  ;;  %v1792_v40 = vadd.f32 %v1791_v34, %v1790_v17  ;;  %v1919_v55 = vld [vmem:[%s3359_s2 + $0xd4] sm:$0xff] }
 0x762   : > { %v1811_v6 = vsel %vm228_vm0, %v1746_v60, 0.0  ;;  %v2771_v4 = vpack.c.bf16 %v1920_v63, %v1919_v55 }
 0x763   : > { %v2850_v27 = vpop.eup %2849  ;;  %v1798_v26 = vrot.slane %v1797_v21, 2  ;;  %v1805_v20 = vrot.slane %v1804_v19, 4  ;;  %v1782_v9 = vrot.slane %v1781_v32, 1 }
 0x764   : > { %v1747_v0 = vmul.f32 %v2850_v27, %v3221_v48 }
 0x765   : > { %v1806_v29 = vadd.f32 %v1805_v20, %v1804_v19  ;;  %v1799_v49 = vadd.f32 %v1798_v26, %v1797_v21  ;;  %v1783_v31 = vadd.f32 %v1782_v9, %v1781_v32 }
 0x766   : > { %v1812_v7 = vsel %vm228_vm0, %v1747_v0, 0.0 }
 0x767   : > { %v1813_v16 = vadd.f32 %v1812_v7, %v1811_v6  ;;  %v1807_v23 = vrot.slane %v1806_v29, 2  ;;  %v1800_v33 = vrot.slane %v1799_v49, 1  ;;  %v1839_v39 = vsel %vm1415_vm5, %v1783_v31, %v1838_v44 }
 0x768   : > { %v1840_v47 = vsel %vm1417_vm6, %v1792_v40, %v1839_v39 }
 0x769   : > { %v1814_v25 = vrot.slane %v1813_v16, 4  ;;  %v1808_v48 = vadd.f32 %v1807_v23, %v1806_v29  ;;  %v1801_v37 = vadd.f32 %v1800_v33, %v1799_v49 }
 0x76b   : > { %v1815_v22 = vadd.f32 %v1814_v25, %v1813_v16  ;;  %v1809_v35 = vrot.slane %v1808_v48, 1  ;;  %v1841_v50 = vsel %vm1419_vm7, %v1801_v37, %v1840_v47 }
 0x76d   : > { %v1816_v36 = vrot.slane %v1815_v22, 2  ;;  %v1810_v41 = vadd.f32 %v1809_v35, %v1808_v48 }
 0x76f   : > { %v1817_v38 = vadd.f32 %v1816_v36, %v1815_v22  ;;  %v1842_v52 = vsel %vm1421_vm8, %v1810_v41, %v1841_v50 }
 0x771   : > { %v1818_v46 = vrot.slane %v1817_v38, 1 }
 0x773   : > { %v1819_v42 = vadd.f32 %v1818_v46, %v1817_v38 }
 0x775   : > { %v1843_v53 = vsel %vm1423_vm9, %v1819_v42, %v1842_v52 }
 0x776   : > { %2614 = vmatmul.mubr.msk.f32.vlgmr.msra.gmra.mrb[50].mxu0 %vm228_vm0, %v1843_v53 }
 0x777   : > { %2769 = vmatpush3.bf16.msra.mxu0 %v2768_v51  ;;  %2624 = vmatprep.mubr.msk.f32.mxu0 %vm2864_vm2, %v2865_v2 }
 0x778   : > { %2770 = vmatprep.subr.bf16.mxu0 %v2863_v59  ;;  %v2142_v59 = vld [vmem:[%s3359_s2 + $0xe4] ss:$0 sm:$0xff] }
 0x77b   : > { %2772 = vmatpush3.bf16.msra.mxu0 %v2771_v4 }
 0x849   : > { %v1912_v58 = vpop.f32.mrb[50].mxu0 }
 0x84a   : > { %v1913_v11 = vadd.f32 %v2140_v56, %v1912_v58  ;;  %v2615_v12 = vpop.f32.mrb[51].mxu0 }
 0x84c   : > { %v1916_v2 = vmax.f32 %v1913_v11, 0.0 }
 0x84e   : > { %2625 = vmatmul.mubr.msk.f32.vlgmr.msra.gmra.mrb[52].mxu0 %vm228_vm0, %v1916_v2 }
 0x921   : > { %v1995_v62 = vpop.f32.mrb[52].mxu0 }
 0x922   : > { %v1996_v13 = vadd.f32 %v2142_v59, %v1995_v62  ;;  %v2626_v10 = vpop.f32.mrb[53].mxu0 }
 0x924   : > { %v2000_v14 = vsel %vm1999_vm10, %v1996_v13, -inf }
 0x925   : > { %2001 = vmax.xlane.f32.xlu0 %v2000_v14 }
 0x9b2   : > { %v2002_v18 = vpop.xlane.xlu0 %2001 }
 0x9b3   : > { %v2003_v57 = vsub.f32 %v1996_v13, %v2002_v18 }
 0x9b5   : > { %v2004_v15 = vmul.f32 1.442695, %v2003_v57 }
 0x9b7   : > { %2851 = vpow2.f32 %v2004_v15 }
 0x9c1   : > { %v2852_v60 = vpop.eup %2851 }
 0x9c2   : > { %v2006_v21 = vsel %vm1999_vm10, %v2852_v60, 0.0 }
 0x9c3   : > { %2007 = vadd.xlane.f32.xlu1 %v2006_v21 }
 0xa50   : > { %v2008_v19 = vpop.xlane.xlu1 %2007 }
 0xa51   : > { %2853 = vlog2.f32 %v2008_v19 }
 0xa5b   : > { %v2854_v27 = vpop.eup %2853 }
 0xa5c   : > { %v2010_v61 = vmul.f32 0.6931472, %v2854_v27 }
 0xa5e   : > { %v2011_v32 = vsub.f32 %v2003_v57, %v2010_v61 }
 0xa60   : > { %2012 = vst.msk [vmem:[%s190_s17] sm:$0xff] %vm1999_vm10, %v2011_v32 }
 0xa61 PF: > { %s13_s12 = sadd.s32 1, %s2861_s12  }
 0xa62   : > { %p10_p5 = scmp.ge.s32.totalorder %s13_s12, 4  }
 0xa64   :  { %12 = sbr.rel (!%p10_p5) target bundleno = 1 (0x1), region = 65 }

</bundles_post_ra>
